<compile_context>
chip_gen: v6e
topology: v6e:2x2x1
jax: 0.10.0
libtpu: 0.0.40
codegen_flags: <defaults>
</compile_context>

<pallas_src>
import functools

import jax
import jax.numpy as jnp
from jax import lax
from jax.experimental import pallas as pl
from jax.experimental.pallas import tpu as pltpu


# Scoped VMEM limit: above the v5e (16 MiB) / v6e (32 MiB) defaults, with
# headroom below v7x's 64 MiB physical per-core VMEM.
_VMEM_LIMIT_BYTES = 40 * 1024 * 1024


def _device_kind():
    try:
        return jax.devices()[0].device_kind.lower()
    except Exception:  # pragma: no cover - CPU fallback during tracing tools
        return ""


_KIND = _device_kind()
_IS_V7X = ("v7" in _KIND) or ("tpu7" in _KIND)


# ---------------------------------------------------------------------------
# Shared in-kernel cell math
# ---------------------------------------------------------------------------
def _cell_body(x, v0, sens_ref, rec_ref, neuron_ref, *, ode_unfolds,
               elapsed_time, N):
    """One SNSCell update.

    x         : (bm, S)   input-mapped sensory values
    v0        : (bm, N)   previous state
    sens_ref  : (3, S, 2N) planes [shift|shift, inv_den|inv_den, erev*mask|w*mask]
    rec_ref   : (3, N, 2N) same layout for recurrent synapses
    neuron_ref: (2, 2N)    row0 = [tau | tau], row1 = [b | 0]
    returns   : (bm, N)   new state
    """
    f32 = jnp.float32
    delta = f32(elapsed_time / ode_unfolds)

    # Sensory pre-activations (computed once).  Combined erev/w lane layout:
    # one clip + one multiply + one sublane reduction gives both sums.
    s_act = jnp.clip((x[:, :, None] - sens_ref[0][None]) * sens_ref[1][None],
                     0.0, 1.0)                                       # (bm, S, 2N)
    sens_red = jnp.sum(sens_ref[2][None] * s_act, axis=1)            # (bm, 2N)

    nrn = neuron_ref[...]                                            # (2, 2N)
    tau = nrn[0:1, :N]                                               # (1, N)
    sens_red_b = sens_red + nrn[1:2, :]                              # += [b | 0]; loop-invariant
    tau_delta = tau + delta                                          # (1, N)

    r_shift = rec_ref[0][None]                                       # (1, N, 2N)
    r_inv = rec_ref[1][None]
    r_wcat = rec_ref[2][None]

    def body(_, v):
        # act duplicated over the two lane halves; one weighted sublane
        # reduction yields [sum_rev_part | sum_w_part] in a single pass.
        act = jnp.clip((v[:, :, None] - r_shift) * r_inv, 0.0, 1.0)  # (bm, N, 2N)
        red = delta * (jnp.sum(r_wcat * act, axis=1) + sens_red_b)   # (bm, 2N)
        numer = tau * v + red[:, :N]
        denom = tau_delta + red[:, N:]
        # Exact rewrite of k/taun/q:
        #   v_new = (tau*v + delta*sum_rev) / (tau + delta + delta*sum_w)
        # Approximate reciprocal (EUP slot, off the serial VALU chain) plus
        # one Newton step -> ~1e-7 relative error, well inside tolerance.
        inv0 = pl.reciprocal(denom, approx=True)
        inv = inv0 * (2.0 - denom * inv0)
        return numer * inv

    return lax.fori_loop(0, ode_unfolds, body, v0, unroll=True)


# ---------------------------------------------------------------------------
# Pallas kernels
# ---------------------------------------------------------------------------
def _sns_step_kernel(inputs_ref, state_ref, inp_aff_ref, sens_ref, rec_ref,
                     neuron_ref, next_state_ref, *, ode_unfolds, elapsed_time,
                     N):
    aff = inp_aff_ref[...]                                           # (2, S)
    x = inputs_ref[...] * aff[0:1, :] + aff[1:2, :]                  # (bm, S)
    next_state_ref[...] = _cell_body(
        x, state_ref[...], sens_ref, rec_ref, neuron_ref,
        ode_unfolds=ode_unfolds, elapsed_time=elapsed_time, N=N)


def _sns_seq_kernel(inputs_ref, state0_ref, inp_aff_ref, sens_ref, rec_ref,
                    neuron_ref, states_ref, v_scr, *, ode_unfolds,
                    elapsed_time, N):
    # State carry lives in VMEM scratch across the sequential time grid.
    @pl.when(pl.program_id(0) == 0)
    def _():
        v_scr[...] = state0_ref[...]

    aff = inp_aff_ref[...]                                           # (2, S)
    x = inputs_ref[0] * aff[0:1, :] + aff[1:2, :]                    # (B, S)
    v_new = _cell_body(
        x, v_scr[...], sens_ref, rec_ref, neuron_ref,
        ode_unfolds=ode_unfolds, elapsed_time=elapsed_time, N=N)
    v_scr[...] = v_new
    states_ref[...] = v_new[None]                                    # (1, B, N)


# ---------------------------------------------------------------------------
# Parameter packing (done ONCE, outside the per-step path)
# ---------------------------------------------------------------------------
def pack_params(params):
    f32 = jnp.float32

    def pack_side(mu, sigma, w, erev, mask):
        mu, sigma = mu.astype(f32), sigma.astype(f32)
        shift = mu - sigma
        inv_den = 0.5 / sigma
        wcat = jnp.concatenate(
            [(erev * mask).astype(f32), (w * mask).astype(f32)], axis=-1)
        return jnp.stack([jnp.concatenate([shift, shift], axis=-1),
                          jnp.concatenate([inv_den, inv_den], axis=-1),
                          wcat], axis=0)                             # (3, pre, 2N)

    sens_pack = pack_side(params["sensory_mu"], params["sensory_sigma"],
                          params["sensory_w"], params["sensory_erev"],
                          params["sensory_sparsity_mask"])           # (3, S, 2N)
    rec_pack = pack_side(params["mu"], params["sigma"], params["w"],
                         params["erev"], params["sparsity_mask"])    # (3, N, 2N)

    N = params["tau"].reshape(-1).shape[0]
    tau = params["tau"].reshape(N).astype(f32)
    b = params["b"].reshape(N).astype(f32)
    neuron_pack = jnp.stack(
        [jnp.concatenate([tau, tau]),
         jnp.concatenate([b, jnp.zeros_like(b)])], axis=0)           # (2, 2N)

    S = params["input_w"].reshape(-1).shape[0]
    inp_aff = jnp.stack([params["input_w"].reshape(S),
                         params["input_b"].reshape(S)],
                        axis=0).astype(f32)                          # (2, S)

    return {
        "sens": sens_pack, "rec": rec_pack, "neuron": neuron_pack,
        "inp_aff": inp_aff,
        "output_w": params["output_w"].astype(f32),
        "output_b": params["output_b"].astype(f32),
    }


# ---------------------------------------------------------------------------
# Tiling / cost helpers
# ---------------------------------------------------------------------------
def _pick_bm(B, S, N):
    two_n = 2 * N
    # ~3 live (bm, N, 2N) f32 temporaries in the unrolled body plus the
    # sensory temporaries and per-batch I/O must fit the scoped VMEM limit.
    per_row = 4 * (3 * N * two_n + 3 * S * two_n + 4 * (S + two_n))
    pack_bytes = 4 * ((3 * S + 3 * N + 2) * two_n + 2 * S)
    budget = int(0.6 * _VMEM_LIMIT_BYTES) - pack_bytes
    cap = max(8, budget // max(per_row, 1))
    if _IS_V7X and B >= 16:
        # Ensure >= 2 grid steps so CORE_PARALLEL can shard across both TCs.
        cap = min(cap, max(8, ((B // 2) // 8) * 8))
    if B <= cap:
        return B
    return max(8, (cap // 8) * 8)


def _cost_estimate(B, S, N, ode_unfolds, T=1):
    two_n = 2 * N
    flops_step = (4 * B * S * two_n
                  + ode_unfolds * (4 * B * N * two_n + 12 * B * N))
    param_bytes = 4 * ((3 * S + 3 * N + 2) * two_n + 2 * S)
    io_bytes_step = 4 * (B * S + 2 * B * N)
    return pl.CostEstimate(
        flops=int(T * flops_step),
        transcendentals=int(T * ode_unfolds * B * N),
        bytes_accessed=int(param_bytes + T * io_bytes_step))


# ---------------------------------------------------------------------------
# Wrappers
# ---------------------------------------------------------------------------
@functools.partial(jax.jit, static_argnames=("ode_unfolds", "elapsed_time"))
def sns_cell_forward(inputs, states, packed, *, ode_unfolds=6,
                     elapsed_time=0.1):
    """Single SNSCell step (mirrors the PyTorch module forward)."""
    B, S = inputs.shape
    _, N = states.shape
    two_n = 2 * N

    bm = _pick_bm(B, S, N)
    grid = (pl.cdiv(B, bm),)
    dims = ((pltpu.CORE_PARALLEL,) if (_IS_V7X and grid[0] >= 2)
            else ("parallel",))

    in_specs = [
        pl.BlockSpec((bm, S), lambda i: (i, 0)),            # inputs
        pl.BlockSpec((bm, N), lambda i: (i, 0)),            # states
        pl.BlockSpec((2, S), lambda i: (0, 0)),             # input affine
        pl.BlockSpec((3, S, two_n), lambda i: (0, 0, 0)),   # sensory pack
        pl.BlockSpec((3, N, two_n), lambda i: (0, 0, 0)),   # recurrent pack
        pl.BlockSpec((2, two_n), lambda i: (0, 0)),         # tau / b
    ]
    out_specs = pl.BlockSpec((bm, N), lambda i: (i, 0))

    kernel = functools.partial(_sns_step_kernel, ode_unfolds=ode_unfolds,
                               elapsed_time=elapsed_time, N=N)

    next_state = pl.pallas_call(
        kernel,
        out_shape=jax.ShapeDtypeStruct((B, N), jnp.float32),
        grid=grid,
        in_specs=in_specs,
        out_specs=out_specs,
        compiler_params=pltpu.CompilerParams(
            dimension_semantics=dims,
            vmem_limit_bytes=_VMEM_LIMIT_BYTES),
        cost_estimate=_cost_estimate(B, S, N, ode_unfolds),
    )(inputs, states, packed["inp_aff"], packed["sens"], packed["rec"],
      packed["neuron"])

    # Output mapping (slice last motor_size neurons, then affine) stays in
    # XLA: avoids a narrow masked store and two parameter DMAs in the kernel.
    M = packed["output_w"].shape[-1]
    outputs = next_state[:, N - M:] * packed["output_w"] + packed["output_b"]
    return outputs, next_state


@functools.partial(jax.jit, static_argnames=("ode_unfolds", "elapsed_time"))
def sns_cell_sequence(inputs_seq, state0, packed, *, ode_unfolds=6,
                      elapsed_time=0.1):
    """T SNSCell steps fused into ONE pallas_call.

    inputs (T, B, S) are streamed over the grid axis; packed parameters are
    DMA'd once (constant index maps) and stay VMEM-resident; the state is
    carried in VMEM scratch.  Returns (outputs_seq (T,B,M), final_state (B,N)).
    """
    T, B, S = inputs_seq.shape
    _, N = state0.shape
    two_n = 2 * N

    in_specs = [
        pl.BlockSpec((1, B, S), lambda t: (t, 0, 0)),        # streamed inputs
        pl.BlockSpec((B, N), lambda t: (0, 0)),              # initial state
        pl.BlockSpec((2, S), lambda t: (0, 0)),
        pl.BlockSpec((3, S, two_n), lambda t: (0, 0, 0)),
        pl.BlockSpec((3, N, two_n), lambda t: (0, 0, 0)),
        pl.BlockSpec((2, two_n), lambda t: (0, 0)),
    ]
    out_specs = pl.BlockSpec((1, B, N), lambda t: (t, 0, 0))

    kernel = functools.partial(_sns_seq_kernel, ode_unfolds=ode_unfolds,
                               elapsed_time=elapsed_time, N=N)

    states_seq = pl.pallas_call(
        kernel,
        out_shape=jax.ShapeDtypeStruct((T, B, N), jnp.float32),
        grid=(T,),
        in_specs=in_specs,
        out_specs=out_specs,
        scratch_shapes=[pltpu.VMEM((B, N), jnp.float32)],
        compiler_params=pltpu.CompilerParams(
            dimension_semantics=("arbitrary",),   # time steps are sequential
            vmem_limit_bytes=_VMEM_LIMIT_BYTES),
        cost_estimate=_cost_estimate(B, S, N, ode_unfolds, T=T),
    )(inputs_seq, state0, packed["inp_aff"], packed["sens"], packed["rec"],
      packed["neuron"])

    M = packed["output_w"].shape[-1]
    outputs_seq = (states_seq[:, :, N - M:] * packed["output_w"]
                   + packed["output_b"])
    return outputs_seq, states_seq[-1]


# ---------------------------------------------------------------------------
# Pure-JAX reference (mirrors the PyTorch forward exactly)
# ---------------------------------------------------------------------------
def sns_cell_reference(inputs, states, params, *, ode_unfolds=6,
                       elapsed_time=0.1):
    def sig(v_pre, mu, sigma):
        v_pre = v_pre[..., None]
        return jnp.clip((v_pre - mu + sigma) / (2.0 * sigma), 0.0, 1.0)

    x = inputs * params["input_w"] + params["input_b"]
    s_act = (sig(x, params["sensory_mu"], params["sensory_sigma"])
             * params["sensory_sparsity_mask"])
    sensory_rev = jnp.sum(params["sensory_erev"] * s_act, axis=1)
    sensory_w = jnp.sum(params["sensory_w"] * s_act, axis=1)

    delta = elapsed_time / ode_unfolds
    v_pre = states
    for _ in range(ode_unfolds):
        act = sig(v_pre, params["mu"], params["sigma"]) * params["sparsity_mask"]
        sum_rev = jnp.sum(params["erev"] * act, axis=1) + sensory_rev + params["b"]
        sum_w = jnp.sum(params["w"] * act, axis=1) + sensory_w
        k = 1.0 / (1.0 + sum_w)
        taun = params["tau"] * k
        q = taun / (taun + delta)
        v_pre = q * v_pre + (1.0 - q) * k * sum_rev

    M = params["output_w"].shape[-1]
    out = v_pre[:, -M:] * params["output_w"] + params["output_b"]
    return out, v_pre


# ---------------------------------------------------------------------------
# Deterministic synthetic parameter init (fully-connected wiring)
# ---------------------------------------------------------------------------
def make_params(key, sensory_size, state_size, motor_size):
    ks = jax.random.split(key, 8)
    u = lambda k, shape, lo, hi: jax.random.uniform(
        k, shape, jnp.float32, minval=lo, maxval=hi)

    return {
        "tau": u(ks[0], (state_size,), 0.001, 2.0),
        "b": u(ks[1], (state_size,), -0.2, 0.2),
        "w": u(ks[2], (state_size, state_size), 0.001, 1.0),
        "sigma": jnp.full((state_size, state_size), 0.5, jnp.float32),
        "mu": jnp.full((state_size, state_size), 0.5, jnp.float32),
        "erev": jnp.where(
            jax.random.bernoulli(ks[3], 0.5, (state_size, state_size)),
            1.0, -1.0).astype(jnp.float32),
        "sensory_w": u(ks[4], (sensory_size, state_size), 0.001, 1.0),
        "sensory_sigma": jnp.full((sensory_size, state_size), 0.5, jnp.float32),
        "sensory_mu": jnp.full((sensory_size, state_size), 0.5, jnp.float32),
        "sensory_erev": jnp.where(
            jax.random.bernoulli(ks[5], 0.5, (sensory_size, state_size)),
            1.0, -1.0).astype(jnp.float32),
        # fully-connected wiring -> |adjacency| is all-ones
        "sparsity_mask": jnp.ones((state_size, state_size), jnp.float32),
        "sensory_sparsity_mask": jnp.ones((sensory_size, state_size), jnp.float32),
        "input_w": jnp.ones((sensory_size,), jnp.float32),
        "input_b": jnp.zeros((sensory_size,), jnp.float32),
        "output_w": jnp.ones((motor_size,), jnp.float32),
        "output_b": jnp.zeros((motor_size,), jnp.float32),
    }


if __name__ == "__main__":
    B, S, N, M = 2, 8, 32, 8   # batch, sensory_size, state_size(units), motor_size
    T = 12                     # sequence length for the fused time-loop path

    key = jax.random.PRNGKey(0)
    k_params, k_in, k_state, k_seq = jax.random.split(key, 4)

    params = make_params(k_params, S, N, M)
    packed = pack_params(params)   # built ONCE, outside the per-step path

    inputs = jax.random.normal(k_in, (B, S), jnp.float32)
    states = jax.random.normal(k_state, (B, N), jnp.float32) * 0.1

    # ---- single-step forward (module semantics) -----------------------------
    outputs, next_state = sns_cell_forward(inputs, states, packed)
    jax.block_until_ready((outputs, next_state))

    ref_out, ref_state = sns_cell_reference(inputs, states, params)
    assert jnp.allclose(outputs, ref_out, atol=5e-5, rtol=5e-5), (
        jnp.max(jnp.abs(outputs - ref_out)))
    assert jnp.allclose(next_state, ref_state, atol=5e-5, rtol=5e-5), (
        jnp.max(jnp.abs(next_state - ref_state)))

    # ---- fused time loop (one pallas_call for T steps) -----------------------
    inputs_seq = jax.random.normal(k_seq, (T, B, S), jnp.float32)
    outs_seq, final_state = sns_cell_sequence(inputs_seq, states, packed)
    jax.block_until_ready((outs_seq, final_state))

    v = states
    ref_outs = []
    for t in range(T):
        o, v = sns_cell_reference(inputs_seq[t], v, params)
        ref_outs.append(o)
    ref_outs = jnp.stack(ref_outs, axis=0)
    assert jnp.allclose(outs_seq, ref_outs, atol=2e-4, rtol=2e-4), (
        jnp.max(jnp.abs(outs_seq - ref_outs)))
    assert jnp.allclose(final_state, v, atol=2e-4, rtol=2e-4), (
        jnp.max(jnp.abs(final_state - v)))

    print("KERNEL_OK")
</pallas_src>

<mosaic_0001>
module attributes {stable_mosaic.version = 11 : i64} {
  func.func @_sns_step_kernel(%arg0: i32, %arg1: memref<2x8xf32, #tpu.memory_space<vmem>>, %arg2: memref<2x32xf32, #tpu.memory_space<vmem>>, %arg3: memref<2x8xf32, #tpu.memory_space<vmem>>, %arg4: memref<3x8x64xf32, #tpu.memory_space<vmem>>, %arg5: memref<3x32x64xf32, #tpu.memory_space<vmem>>, %arg6: memref<2x64xf32, #tpu.memory_space<vmem>>, %arg7: memref<2x32xf32, #tpu.memory_space<vmem>>) attributes {dimension_semantics = [#tpu.dimension_semantics<parallel>], iteration_bounds = array<i64: 1>, scalar_prefetch = 0 : i64, scratch_operands = 0 : i64, tpu.core_type = #tpu.core_type<tc>, window_params = [{transform_indices = @transform_0, window_bounds = array<i64: 2, 8>}, {transform_indices = @transform_1, window_bounds = array<i64: 2, 32>}, {pipeline_mode = #tpu.pipeline_mode<synchronous>, transform_indices = @transform_2, window_bounds = array<i64: 2, 8>}, {pipeline_mode = #tpu.pipeline_mode<synchronous>, transform_indices = @transform_3, window_bounds = array<i64: 3, 8, 64>}, {pipeline_mode = #tpu.pipeline_mode<synchronous>, transform_indices = @transform_4, window_bounds = array<i64: 3, 32, 64>}, {pipeline_mode = #tpu.pipeline_mode<synchronous>, transform_indices = @transform_5, window_bounds = array<i64: 2, 64>}, {transform_indices = @transform_6, window_bounds = array<i64: 2, 32>}]} {
    %c0 = arith.constant 0 : index
    %c0_0 = arith.constant 0 : index
    %0 = vector.load %arg3[%c0, %c0_0] : memref<2x8xf32, #tpu.memory_space<vmem>>, vector<2x8xf32>
    %c0_1 = arith.constant 0 : index
    %c0_2 = arith.constant 0 : index
    %1 = vector.load %arg1[%c0_1, %c0_2] : memref<2x8xf32, #tpu.memory_space<vmem>>, vector<2x8xf32>
    %2 = vector.extract_strided_slice %0 {offsets = [0, 0], sizes = [1, 8], strides = [1, 1]} : vector<2x8xf32> to vector<1x8xf32>
    %3 = vector.broadcast %2 : vector<1x8xf32> to vector<2x8xf32>
    %4 = arith.mulf %1, %3 : vector<2x8xf32>
    %5 = vector.extract_strided_slice %0 {offsets = [1, 0], sizes = [1, 8], strides = [1, 1]} : vector<2x8xf32> to vector<1x8xf32>
    %6 = vector.broadcast %5 : vector<1x8xf32> to vector<2x8xf32>
    %7 = arith.addf %4, %6 : vector<2x8xf32>
    %c0_3 = arith.constant 0 : index
    %c0_4 = arith.constant 0 : index
    %8 = vector.load %arg2[%c0_3, %c0_4] : memref<2x32xf32, #tpu.memory_space<vmem>>, vector<2x32xf32>
    %9 = vector.shape_cast %7 : vector<2x8xf32> to vector<2x8x1xf32>
    %c0_5 = arith.constant 0 : index
    %c0_6 = arith.constant 0 : index
    %c0_7 = arith.constant 0 : index
    %10 = vector.load %arg4[%c0_5, %c0_6, %c0_7] : memref<3x8x64xf32, #tpu.memory_space<vmem>>, vector<1x8x64xf32>
    %11 = vector.shape_cast %10 : vector<1x8x64xf32> to vector<8x64xf32>
    %12 = vector.shape_cast %11 : vector<8x64xf32> to vector<1x8x64xf32>
    %13 = vector.broadcast %9 : vector<2x8x1xf32> to vector<2x8x64xf32>
    %14 = vector.broadcast %12 : vector<1x8x64xf32> to vector<2x8x64xf32>
    %15 = arith.subf %13, %14 : vector<2x8x64xf32>
    %c1 = arith.constant 1 : index
    %c0_8 = arith.constant 0 : index
    %c0_9 = arith.constant 0 : index
    %16 = vector.load %arg4[%c1, %c0_8, %c0_9] : memref<3x8x64xf32, #tpu.memory_space<vmem>>, vector<1x8x64xf32>
    %17 = vector.shape_cast %16 : vector<1x8x64xf32> to vector<8x64xf32>
    %18 = vector.shape_cast %17 : vector<8x64xf32> to vector<1x8x64xf32>
    %19 = vector.broadcast %18 : vector<1x8x64xf32> to vector<2x8x64xf32>
    %20 = arith.mulf %15, %19 : vector<2x8x64xf32>
    %cst = arith.constant 0.000000e+00 : f32
    %cst_10 = arith.constant 1.000000e+00 : f32
    %21 = vector.broadcast %cst : f32 to vector<2x8x64xf32>
    %22 = arith.maximumf %21, %20 : vector<2x8x64xf32>
    %23 = vector.broadcast %cst_10 : f32 to vector<2x8x64xf32>
    %24 = arith.minimumf %23, %22 : vector<2x8x64xf32>
    %c2 = arith.constant 2 : index
    %c0_11 = arith.constant 0 : index
    %c0_12 = arith.constant 0 : index
    %25 = vector.load %arg4[%c2, %c0_11, %c0_12] : memref<3x8x64xf32, #tpu.memory_space<vmem>>, vector<1x8x64xf32>
    %26 = vector.shape_cast %25 : vector<1x8x64xf32> to vector<8x64xf32>
    %27 = vector.shape_cast %26 : vector<8x64xf32> to vector<1x8x64xf32>
    %28 = vector.broadcast %27 : vector<1x8x64xf32> to vector<2x8x64xf32>
    %29 = arith.mulf %28, %24 : vector<2x8x64xf32>
    %cst_13 = arith.constant dense<0.000000e+00> : vector<2x64xf32>
    %30 = vector.multi_reduction <add>, %29, %cst_13 [1] : vector<2x8x64xf32> to vector<2x64xf32>
    %c0_14 = arith.constant 0 : index
    %c0_15 = arith.constant 0 : index
    %31 = vector.load %arg6[%c0_14, %c0_15] : memref<2x64xf32, #tpu.memory_space<vmem>>, vector<2x64xf32>
    %32 = vector.extract_strided_slice %31 {offsets = [0, 0], sizes = [1, 32], strides = [1, 1]} : vector<2x64xf32> to vector<1x32xf32>
    %33 = vector.extract_strided_slice %31 {offsets = [1, 0], sizes = [1, 64], strides = [1, 1]} : vector<2x64xf32> to vector<1x64xf32>
    %34 = vector.broadcast %33 : vector<1x64xf32> to vector<2x64xf32>
    %35 = arith.addf %30, %34 : vector<2x64xf32>
    %cst_16 = arith.constant 0.0166666675 : f32
    %36 = vector.broadcast %cst_16 : f32 to vector<1x32xf32>
    %37 = arith.addf %32, %36 : vector<1x32xf32>
    %c0_17 = arith.constant 0 : index
    %c0_18 = arith.constant 0 : index
    %c0_19 = arith.constant 0 : index
    %38 = vector.load %arg5[%c0_17, %c0_18, %c0_19] : memref<3x32x64xf32, #tpu.memory_space<vmem>>, vector<1x32x64xf32>
    %39 = vector.shape_cast %38 : vector<1x32x64xf32> to vector<32x64xf32>
    %40 = vector.shape_cast %39 : vector<32x64xf32> to vector<1x32x64xf32>
    %c1_20 = arith.constant 1 : index
    %c0_21 = arith.constant 0 : index
    %c0_22 = arith.constant 0 : index
    %41 = vector.load %arg5[%c1_20, %c0_21, %c0_22] : memref<3x32x64xf32, #tpu.memory_space<vmem>>, vector<1x32x64xf32>
    %42 = vector.shape_cast %41 : vector<1x32x64xf32> to vector<32x64xf32>
    %43 = vector.shape_cast %42 : vector<32x64xf32> to vector<1x32x64xf32>
    %c2_23 = arith.constant 2 : index
    %c0_24 = arith.constant 0 : index
    %c0_25 = arith.constant 0 : index
    %44 = vector.load %arg5[%c2_23, %c0_24, %c0_25] : memref<3x32x64xf32, #tpu.memory_space<vmem>>, vector<1x32x64xf32>
    %45 = vector.shape_cast %44 : vector<1x32x64xf32> to vector<32x64xf32>
    %46 = vector.shape_cast %45 : vector<32x64xf32> to vector<1x32x64xf32>
    %cst_26 = arith.constant 0.0166666675 : f32
    %c0_i32 = arith.constant 0 : i32
    %47 = vector.shape_cast %8 : vector<2x32xf32> to vector<2x32x1xf32>
    %48 = vector.broadcast %47 : vector<2x32x1xf32> to vector<2x32x64xf32>
    %49 = vector.broadcast %40 : vector<1x32x64xf32> to vector<2x32x64xf32>
    %50 = arith.subf %48, %49 : vector<2x32x64xf32>
    %51 = vector.broadcast %43 : vector<1x32x64xf32> to vector<2x32x64xf32>
    %52 = arith.mulf %50, %51 : vector<2x32x64xf32>
    %cst_27 = arith.constant 0.000000e+00 : f32
    %cst_28 = arith.constant 1.000000e+00 : f32
    %53 = vector.broadcast %cst_27 : f32 to vector<2x32x64xf32>
    %54 = arith.maximumf %53, %52 : vector<2x32x64xf32>
    %55 = vector.broadcast %cst_28 : f32 to vector<2x32x64xf32>
    %56 = arith.minimumf %55, %54 : vector<2x32x64xf32>
    %57 = vector.broadcast %46 : vector<1x32x64xf32> to vector<2x32x64xf32>
    %58 = arith.mulf %57, %56 : vector<2x32x64xf32>
    %cst_29 = arith.constant dense<0.000000e+00> : vector<2x64xf32>
    %59 = vector.multi_reduction <add>, %58, %cst_29 [1] : vector<2x32x64xf32> to vector<2x64xf32>
    %60 = arith.addf %59, %35 : vector<2x64xf32>
    %61 = vector.broadcast %cst_26 : f32 to vector<2x64xf32>
    %62 = arith.mulf %61, %60 : vector<2x64xf32>
    %63 = vector.broadcast %32 : vector<1x32xf32> to vector<2x32xf32>
    %64 = arith.mulf %63, %8 : vector<2x32xf32>
    %65 = vector.extract_strided_slice %62 {offsets = [0, 0], sizes = [2, 32], strides = [1, 1]} : vector<2x64xf32> to vector<2x32xf32>
    %66 = arith.addf %64, %65 : vector<2x32xf32>
    %67 = vector.extract_strided_slice %62 {offsets = [0, 32], sizes = [2, 32], strides = [1, 1]} : vector<2x64xf32> to vector<2x32xf32>
    %68 = vector.broadcast %37 : vector<1x32xf32> to vector<2x32xf32>
    %69 = arith.addf %68, %67 : vector<2x32xf32>
    %70 = tpu.reciprocal %69 {approx = true} : vector<2x32xf32> -> vector<2x32xf32>
    %71 = arith.mulf %69, %70 : vector<2x32xf32>
    %cst_30 = arith.constant 2.000000e+00 : f32
    %72 = vector.broadcast %cst_30 : f32 to vector<2x32xf32>
    %73 = arith.subf %72, %71 : vector<2x32xf32>
    %74 = arith.mulf %70, %73 : vector<2x32xf32>
    %75 = arith.mulf %66, %74 : vector<2x32xf32>
    %c1_i32 = arith.constant 1 : i32
    %76 = vector.shape_cast %75 : vector<2x32xf32> to vector<2x32x1xf32>
    %77 = vector.broadcast %76 : vector<2x32x1xf32> to vector<2x32x64xf32>
    %78 = vector.broadcast %40 : vector<1x32x64xf32> to vector<2x32x64xf32>
    %79 = arith.subf %77, %78 : vector<2x32x64xf32>
    %80 = vector.broadcast %43 : vector<1x32x64xf32> to vector<2x32x64xf32>
    %81 = arith.mulf %79, %80 : vector<2x32x64xf32>
    %cst_31 = arith.constant 0.000000e+00 : f32
    %cst_32 = arith.constant 1.000000e+00 : f32
    %82 = vector.broadcast %cst_31 : f32 to vector<2x32x64xf32>
    %83 = arith.maximumf %82, %81 : vector<2x32x64xf32>
    %84 = vector.broadcast %cst_32 : f32 to vector<2x32x64xf32>
    %85 = arith.minimumf %84, %83 : vector<2x32x64xf32>
    %86 = vector.broadcast %46 : vector<1x32x64xf32> to vector<2x32x64xf32>
    %87 = arith.mulf %86, %85 : vector<2x32x64xf32>
    %cst_33 = arith.constant dense<0.000000e+00> : vector<2x64xf32>
    %88 = vector.multi_reduction <add>, %87, %cst_33 [1] : vector<2x32x64xf32> to vector<2x64xf32>
    %89 = arith.addf %88, %35 : vector<2x64xf32>
    %90 = vector.broadcast %cst_26 : f32 to vector<2x64xf32>
    %91 = arith.mulf %90, %89 : vector<2x64xf32>
    %92 = vector.broadcast %32 : vector<1x32xf32> to vector<2x32xf32>
    %93 = arith.mulf %92, %75 : vector<2x32xf32>
    %94 = vector.extract_strided_slice %91 {offsets = [0, 0], sizes = [2, 32], strides = [1, 1]} : vector<2x64xf32> to vector<2x32xf32>
    %95 = arith.addf %93, %94 : vector<2x32xf32>
    %96 = vector.extract_strided_slice %91 {offsets = [0, 32], sizes = [2, 32], strides = [1, 1]} : vector<2x64xf32> to vector<2x32xf32>
    %97 = vector.broadcast %37 : vector<1x32xf32> to vector<2x32xf32>
    %98 = arith.addf %97, %96 : vector<2x32xf32>
    %99 = tpu.reciprocal %98 {approx = true} : vector<2x32xf32> -> vector<2x32xf32>
    %100 = arith.mulf %98, %99 : vector<2x32xf32>
    %cst_34 = arith.constant 2.000000e+00 : f32
    %101 = vector.broadcast %cst_34 : f32 to vector<2x32xf32>
    %102 = arith.subf %101, %100 : vector<2x32xf32>
    %103 = arith.mulf %99, %102 : vector<2x32xf32>
    %104 = arith.mulf %95, %103 : vector<2x32xf32>
    %c2_i32 = arith.constant 2 : i32
    %105 = vector.shape_cast %104 : vector<2x32xf32> to vector<2x32x1xf32>
    %106 = vector.broadcast %105 : vector<2x32x1xf32> to vector<2x32x64xf32>
    %107 = vector.broadcast %40 : vector<1x32x64xf32> to vector<2x32x64xf32>
    %108 = arith.subf %106, %107 : vector<2x32x64xf32>
    %109 = vector.broadcast %43 : vector<1x32x64xf32> to vector<2x32x64xf32>
    %110 = arith.mulf %108, %109 : vector<2x32x64xf32>
    %cst_35 = arith.constant 0.000000e+00 : f32
    %cst_36 = arith.constant 1.000000e+00 : f32
    %111 = vector.broadcast %cst_35 : f32 to vector<2x32x64xf32>
    %112 = arith.maximumf %111, %110 : vector<2x32x64xf32>
    %113 = vector.broadcast %cst_36 : f32 to vector<2x32x64xf32>
    %114 = arith.minimumf %113, %112 : vector<2x32x64xf32>
    %115 = vector.broadcast %46 : vector<1x32x64xf32> to vector<2x32x64xf32>
    %116 = arith.mulf %115, %114 : vector<2x32x64xf32>
    %cst_37 = arith.constant dense<0.000000e+00> : vector<2x64xf32>
    %117 = vector.multi_reduction <add>, %116, %cst_37 [1] : vector<2x32x64xf32> to vector<2x64xf32>
    %118 = arith.addf %117, %35 : vector<2x64xf32>
    %119 = vector.broadcast %cst_26 : f32 to vector<2x64xf32>
    %120 = arith.mulf %119, %118 : vector<2x64xf32>
    %121 = vector.broadcast %32 : vector<1x32xf32> to vector<2x32xf32>
    %122 = arith.mulf %121, %104 : vector<2x32xf32>
    %123 = vector.extract_strided_slice %120 {offsets = [0, 0], sizes = [2, 32], strides = [1, 1]} : vector<2x64xf32> to vector<2x32xf32>
    %124 = arith.addf %122, %123 : vector<2x32xf32>
    %125 = vector.extract_strided_slice %120 {offsets = [0, 32], sizes = [2, 32], strides = [1, 1]} : vector<2x64xf32> to vector<2x32xf32>
    %126 = vector.broadcast %37 : vector<1x32xf32> to vector<2x32xf32>
    %127 = arith.addf %126, %125 : vector<2x32xf32>
    %128 = tpu.reciprocal %127 {approx = true} : vector<2x32xf32> -> vector<2x32xf32>
    %129 = arith.mulf %127, %128 : vector<2x32xf32>
    %cst_38 = arith.constant 2.000000e+00 : f32
    %130 = vector.broadcast %cst_38 : f32 to vector<2x32xf32>
    %131 = arith.subf %130, %129 : vector<2x32xf32>
    %132 = arith.mulf %128, %131 : vector<2x32xf32>
    %133 = arith.mulf %124, %132 : vector<2x32xf32>
    %c3_i32 = arith.constant 3 : i32
    %134 = vector.shape_cast %133 : vector<2x32xf32> to vector<2x32x1xf32>
    %135 = vector.broadcast %134 : vector<2x32x1xf32> to vector<2x32x64xf32>
    %136 = vector.broadcast %40 : vector<1x32x64xf32> to vector<2x32x64xf32>
    %137 = arith.subf %135, %136 : vector<2x32x64xf32>
    %138 = vector.broadcast %43 : vector<1x32x64xf32> to vector<2x32x64xf32>
    %139 = arith.mulf %137, %138 : vector<2x32x64xf32>
    %cst_39 = arith.constant 0.000000e+00 : f32
    %cst_40 = arith.constant 1.000000e+00 : f32
    %140 = vector.broadcast %cst_39 : f32 to vector<2x32x64xf32>
    %141 = arith.maximumf %140, %139 : vector<2x32x64xf32>
    %142 = vector.broadcast %cst_40 : f32 to vector<2x32x64xf32>
    %143 = arith.minimumf %142, %141 : vector<2x32x64xf32>
    %144 = vector.broadcast %46 : vector<1x32x64xf32> to vector<2x32x64xf32>
    %145 = arith.mulf %144, %143 : vector<2x32x64xf32>
    %cst_41 = arith.constant dense<0.000000e+00> : vector<2x64xf32>
    %146 = vector.multi_reduction <add>, %145, %cst_41 [1] : vector<2x32x64xf32> to vector<2x64xf32>
    %147 = arith.addf %146, %35 : vector<2x64xf32>
    %148 = vector.broadcast %cst_26 : f32 to vector<2x64xf32>
    %149 = arith.mulf %148, %147 : vector<2x64xf32>
    %150 = vector.broadcast %32 : vector<1x32xf32> to vector<2x32xf32>
    %151 = arith.mulf %150, %133 : vector<2x32xf32>
    %152 = vector.extract_strided_slice %149 {offsets = [0, 0], sizes = [2, 32], strides = [1, 1]} : vector<2x64xf32> to vector<2x32xf32>
    %153 = arith.addf %151, %152 : vector<2x32xf32>
    %154 = vector.extract_strided_slice %149 {offsets = [0, 32], sizes = [2, 32], strides = [1, 1]} : vector<2x64xf32> to vector<2x32xf32>
    %155 = vector.broadcast %37 : vector<1x32xf32> to vector<2x32xf32>
    %156 = arith.addf %155, %154 : vector<2x32xf32>
    %157 = tpu.reciprocal %156 {approx = true} : vector<2x32xf32> -> vector<2x32xf32>
    %158 = arith.mulf %156, %157 : vector<2x32xf32>
    %cst_42 = arith.constant 2.000000e+00 : f32
    %159 = vector.broadcast %cst_42 : f32 to vector<2x32xf32>
    %160 = arith.subf %159, %158 : vector<2x32xf32>
    %161 = arith.mulf %157, %160 : vector<2x32xf32>
    %162 = arith.mulf %153, %161 : vector<2x32xf32>
    %c4_i32 = arith.constant 4 : i32
    %163 = vector.shape_cast %162 : vector<2x32xf32> to vector<2x32x1xf32>
    %164 = vector.broadcast %163 : vector<2x32x1xf32> to vector<2x32x64xf32>
    %165 = vector.broadcast %40 : vector<1x32x64xf32> to vector<2x32x64xf32>
    %166 = arith.subf %164, %165 : vector<2x32x64xf32>
    %167 = vector.broadcast %43 : vector<1x32x64xf32> to vector<2x32x64xf32>
    %168 = arith.mulf %166, %167 : vector<2x32x64xf32>
    %cst_43 = arith.constant 0.000000e+00 : f32
    %cst_44 = arith.constant 1.000000e+00 : f32
    %169 = vector.broadcast %cst_43 : f32 to vector<2x32x64xf32>
    %170 = arith.maximumf %169, %168 : vector<2x32x64xf32>
    %171 = vector.broadcast %cst_44 : f32 to vector<2x32x64xf32>
    %172 = arith.minimumf %171, %170 : vector<2x32x64xf32>
    %173 = vector.broadcast %46 : vector<1x32x64xf32> to vector<2x32x64xf32>
    %174 = arith.mulf %173, %172 : vector<2x32x64xf32>
    %cst_45 = arith.constant dense<0.000000e+00> : vector<2x64xf32>
    %175 = vector.multi_reduction <add>, %174, %cst_45 [1] : vector<2x32x64xf32> to vector<2x64xf32>
    %176 = arith.addf %175, %35 : vector<2x64xf32>
    %177 = vector.broadcast %cst_26 : f32 to vector<2x64xf32>
    %178 = arith.mulf %177, %176 : vector<2x64xf32>
    %179 = vector.broadcast %32 : vector<1x32xf32> to vector<2x32xf32>
    %180 = arith.mulf %179, %162 : vector<2x32xf32>
    %181 = vector.extract_strided_slice %178 {offsets = [0, 0], sizes = [2, 32], strides = [1, 1]} : vector<2x64xf32> to vector<2x32xf32>
    %182 = arith.addf %180, %181 : vector<2x32xf32>
    %183 = vector.extract_strided_slice %178 {offsets = [0, 32], sizes = [2, 32], strides = [1, 1]} : vector<2x64xf32> to vector<2x32xf32>
    %184 = vector.broadcast %37 : vector<1x32xf32> to vector<2x32xf32>
    %185 = arith.addf %184, %183 : vector<2x32xf32>
    %186 = tpu.reciprocal %185 {approx = true} : vector<2x32xf32> -> vector<2x32xf32>
    %187 = arith.mulf %185, %186 : vector<2x32xf32>
    %cst_46 = arith.constant 2.000000e+00 : f32
    %188 = vector.broadcast %cst_46 : f32 to vector<2x32xf32>
    %189 = arith.subf %188, %187 : vector<2x32xf32>
    %190 = arith.mulf %186, %189 : vector<2x32xf32>
    %191 = arith.mulf %182, %190 : vector<2x32xf32>
    %c5_i32 = arith.constant 5 : i32
    %192 = vector.shape_cast %191 : vector<2x32xf32> to vector<2x32x1xf32>
    %193 = vector.broadcast %192 : vector<2x32x1xf32> to vector<2x32x64xf32>
    %194 = vector.broadcast %40 : vector<1x32x64xf32> to vector<2x32x64xf32>
    %195 = arith.subf %193, %194 : vector<2x32x64xf32>
    %196 = vector.broadcast %43 : vector<1x32x64xf32> to vector<2x32x64xf32>
    %197 = arith.mulf %195, %196 : vector<2x32x64xf32>
    %cst_47 = arith.constant 0.000000e+00 : f32
    %cst_48 = arith.constant 1.000000e+00 : f32
    %198 = vector.broadcast %cst_47 : f32 to vector<2x32x64xf32>
    %199 = arith.maximumf %198, %197 : vector<2x32x64xf32>
    %200 = vector.broadcast %cst_48 : f32 to vector<2x32x64xf32>
    %201 = arith.minimumf %200, %199 : vector<2x32x64xf32>
    %202 = vector.broadcast %46 : vector<1x32x64xf32> to vector<2x32x64xf32>
    %203 = arith.mulf %202, %201 : vector<2x32x64xf32>
    %cst_49 = arith.constant dense<0.000000e+00> : vector<2x64xf32>
    %204 = vector.multi_reduction <add>, %203, %cst_49 [1] : vector<2x32x64xf32> to vector<2x64xf32>
    %205 = arith.addf %204, %35 : vector<2x64xf32>
    %206 = vector.broadcast %cst_26 : f32 to vector<2x64xf32>
    %207 = arith.mulf %206, %205 : vector<2x64xf32>
    %208 = vector.broadcast %32 : vector<1x32xf32> to vector<2x32xf32>
    %209 = arith.mulf %208, %191 : vector<2x32xf32>
    %210 = vector.extract_strided_slice %207 {offsets = [0, 0], sizes = [2, 32], strides = [1, 1]} : vector<2x64xf32> to vector<2x32xf32>
    %211 = arith.addf %209, %210 : vector<2x32xf32>
    %212 = vector.extract_strided_slice %207 {offsets = [0, 32], sizes = [2, 32], strides = [1, 1]} : vector<2x64xf32> to vector<2x32xf32>
    %213 = vector.broadcast %37 : vector<1x32xf32> to vector<2x32xf32>
    %214 = arith.addf %213, %212 : vector<2x32xf32>
    %215 = tpu.reciprocal %214 {approx = true} : vector<2x32xf32> -> vector<2x32xf32>
    %216 = arith.mulf %214, %215 : vector<2x32xf32>
    %cst_50 = arith.constant 2.000000e+00 : f32
    %217 = vector.broadcast %cst_50 : f32 to vector<2x32xf32>
    %218 = arith.subf %217, %216 : vector<2x32xf32>
    %219 = arith.mulf %215, %218 : vector<2x32xf32>
    %220 = arith.mulf %211, %219 : vector<2x32xf32>
    %c0_51 = arith.constant 0 : index
    %c0_52 = arith.constant 0 : index
    %221 = vector.load %arg7[%c0_51, %c0_52] : memref<2x32xf32, #tpu.memory_space<vmem>>, vector<2x32xf32>
    tpu.vector_store %arg7[%c0_51, %c0_52], %220 {strides = array<i32>} : memref<2x32xf32, #tpu.memory_space<vmem>>, vector<2x32xf32>,
    return
  }
  func.func @transform_0(%arg0: i32) -> (i32, i32) {
    %c0_i32 = arith.constant 0 : i32
    %c0_i32_0 = arith.constant 0 : i32
    return %arg0, %c0_i32 : i32, i32
  }
  func.func @transform_1(%arg0: i32) -> (i32, i32) {
    %c0_i32 = arith.constant 0 : i32
    %c0_i32_0 = arith.constant 0 : i32
    return %arg0, %c0_i32 : i32, i32
  }
  func.func @transform_2(%arg0: i32) -> (i32, i32) {
    %c0_i32 = arith.constant 0 : i32
    %c0_i32_0 = arith.constant 0 : i32
    %c0_i32_1 = arith.constant 0 : i32
    return %c0_i32, %c0_i32_0 : i32, i32
  }
  func.func @transform_3(%arg0: i32) -> (i32, i32, i32) {
    %c0_i32 = arith.constant 0 : i32
    %c0_i32_0 = arith.constant 0 : i32
    %c0_i32_1 = arith.constant 0 : i32
    %c0_i32_2 = arith.constant 0 : i32
    return %c0_i32, %c0_i32_0, %c0_i32_1 : i32, i32, i32
  }
  func.func @transform_4(%arg0: i32) -> (i32, i32, i32) {
    %c0_i32 = arith.constant 0 : i32
    %c0_i32_0 = arith.constant 0 : i32
    %c0_i32_1 = arith.constant 0 : i32
    %c0_i32_2 = arith.constant 0 : i32
    return %c0_i32, %c0_i32_0, %c0_i32_1 : i32, i32, i32
  }
  func.func @transform_5(%arg0: i32) -> (i32, i32) {
    %c0_i32 = arith.constant 0 : i32
    %c0_i32_0 = arith.constant 0 : i32
    %c0_i32_1 = arith.constant 0 : i32
    return %c0_i32, %c0_i32_0 : i32, i32
  }
  func.func @transform_6(%arg0: i32) -> (i32, i32) {
    %c0_i32 = arith.constant 0 : i32
    %c0_i32_0 = arith.constant 0 : i32
    return %arg0, %c0_i32 : i32, i32
  }
}

</mosaic_0001>

<bundles_post_ra>
// kernel: sns_cell_forward.1
= control target key start
LH: loop header
LB: loop body
LE: loop exit
PB: predicated region body
PF: predicated region fallthrough
CT: control target
= control target key end

     0   :  { %11 = vsyncpa [#allocation3], 0  ;;  %s1386_s0 = inlined_call_operand.hbm [shape: f32[2,8], index: 0, kind: input, shape index: {}]   ;;  %s1387_s1 = inlined_call_operand.hbm [shape: f32[2,32], index: 1, kind: input, shape index: {}]   ;;  %s1388_s2 = inlined_call_operand.vmem [shape: f32[2,8], index: 2, kind: input, shape index: {}]   ;;  %s1389_s3 = inlined_call_operand.hbm [shape: f32[3,8,64], index: 3, kind: input, shape index: {}]   ;;  %s1390_s4 = inlined_call_operand.hbm [shape: f32[3,32,64], index: 4, kind: input, shape index: {}]   ;;  %s1391_s5 = inlined_call_operand.vmem [shape: f32[2,64], index: 5, kind: input, shape index: {}]   ;;  %s1392_s6 = inlined_call_operand.vmem [shape: f32[2,32], index: 6, kind: output, shape index: {}]  }
   0x1   :  { %12 = vsyncpa [#allocation5], 0 }
   0x2   :  { %13 = vsyncpa [#allocation8], 0  ;;  %s1032_s21 = smov [#allocation4]   ;;  %s1033_s23 = smov [#allocation2]  }
   0x3   :  { %s30_s22 = sshll.u32 %s1032_s21, 4  ;;  %s20_s24 = sshll.u32 %s1033_s23, 4  ;;  %s31_s22 = int_to_ptr.vmem [resolvable:$true] %s30_s22  ;;  %s21_s24 = int_to_ptr.vmem [resolvable:$true] %s20_s24 }
   0x4   :  { %s954_s25 = scalar_lea.vmem %s31_s22, 32  ;;  %p959_p1 = scmp.lt.s32.totalorder %s31_s22, %s31_s22 }
   0x5   :  { %p955_p0 = scmp.ne.s32.totalorder %s31_s22, %s954_s25  ;;  %p960_p2 = scmp.lt.s32.totalorder %s954_s25, %s954_s25 }
   0x7   :  { %p961_p3 = por %p960_p2, %p959_p1 }
   0x9   :  { %p962_p4 = pnand %p961_p3, %p955_p0 }
   0xb   :  { %965 = shalt.err (!%p962_p4)
}
   0xc   :  { %33 = dma.hbm_to_vmem [thread:$0]  %s1387_s1, 32, %s31_s22, [#allocation5]  }
   0xd   :  { %s974_s28 = scalar_lea.vmem %s21_s24, 32  ;;  %p979_p6 = scmp.lt.s32.totalorder %s21_s24, %s21_s24 }
   0xe   :  { %p975_p5 = scmp.ne.s32.totalorder %s21_s24, %s974_s28  ;;  %p980_p7 = scmp.lt.s32.totalorder %s974_s28, %s974_s28 }
  0x10   :  { %p981_p8 = por %p980_p7, %p979_p6 }
  0x12   :  { %p982_p9 = pnand %p981_p8, %p975_p5 }
  0x14   :  { %985 = shalt.err (!%p982_p9)
}
  0x15   :  { %23 = dma.hbm_to_vmem [thread:$0]  %s1386_s0, 32, %s21_s24, [#allocation3]  }
  0x16   :  { %s1034_s7 = smov [#allocation6]  }
  0x17   :  { %s41_s8 = sshll.u32 %s1034_s7, 4  ;;  %s42_s8 = int_to_ptr.vmem [resolvable:$true] %s41_s8 }
  0x18   :  { %s994_s9 = scalar_lea.vmem %s42_s8, 384  ;;  %p999_p11 = scmp.lt.s32.totalorder %s42_s8, %s42_s8 }
  0x19   :  { %p995_p10 = scmp.ne.s32.totalorder %s42_s8, %s994_s9  ;;  %p1000_p12 = scmp.lt.s32.totalorder %s994_s9, %s994_s9 }
  0x1b   :  { %p1001_p13 = por %p1000_p12, %p999_p11 }
  0x1d   :  { %p1002_p0 = pnand %p1001_p13, %p995_p10 }
  0x1f   :  { %1005 = shalt.err (!%p1002_p0)
}
  0x20   :  { %s1035_s1 = smov 128   ;;  %s1036_s10 = smov 8  }
  0x21   :  { %47 = dma.hbm_to_vmem [thread:$0]  %s1389_s3, 384, %s42_s8, [#allocation5], %s1035_s1, %s1035_s1, %s1036_s10  }
  0x22   :  { %s1037_s13 = smov [#allocation7]  }
  0x23   :  { %s53_s14 = sshll.u32 %s1037_s13, 4  ;;  %s54_s14 = int_to_ptr.vmem [resolvable:$true] %s53_s14 }
  0x24   :  { %s1014_s0 = scalar_lea.vmem %s54_s14, 1536  ;;  %p1019_p2 = scmp.lt.s32.totalorder %s54_s14, %s54_s14 }
  0x25   :  { %p1015_p1 = scmp.ne.s32.totalorder %s54_s14, %s1014_s0  ;;  %p1020_p3 = scmp.lt.s32.totalorder %s1014_s0, %s1014_s0 }
  0x27   :  { %p1021_p4 = por %p1020_p3, %p1019_p2 }
  0x29   :  { %p1022_p5 = pnand %p1021_p4, %p1015_p1 }
  0x2b   :  { %1025 = shalt.err (!%p1022_p5)
}
  0x2c   :  { %59 = dma.hbm_to_vmem [thread:$0]  %s1390_s4, 1536, %s54_s14, [#allocation8], %s1035_s1, %s1035_s1, %s1036_s10  }
  0x2d   :  { %1026 = dma.done.wait [#allocation3], 32  }
  0x2e   :  { %1027 = vsyncadd [#allocation3], 4294967264 }
  0x2f   :  { %1028 = dma.done.wait [#allocation5], 416  }
  0x30   :  { %1029 = vsyncadd [#allocation5], 4294966880 }
  0x31   :  { %1030 = dma.done.wait [#allocation8], 1536  }
  0x32   :  { %1031 = vsyncadd [#allocation8], 4294965760  ;;  %v76_v0 = vlaneseq  ;;  %v1090_v4 = vld [vmem:[#allocation4] sm:$0x3]  ;;  %v74_v5 = vld [vmem:[%s1388_s2] sm:$0x3] }
  0x33   :  { %v75_v6 = vld [vmem:[#allocation2] sm:$0x3]  ;;  %v1109_v21 = vld [vmem:[#allocation7 + $0x8] sm:$0xff]  ;;  %v1119_v32 = vld [vmem:[#allocation7 + $0x10] sm:$0xff]  ;;  %vm116_vm0 = vcmask 523264   ;;  %vm269_vm1 = vcmask 1041409  }
  0x34   :  { %v77_v1 = vshrl.u32 %v76_v0, 7  ;;  %v1103_v15 = vld [vmem:[#allocation7] sm:$0xff]  ;;  %v1112_v23 = vld [vmem:[#allocation7 + $0x28] sm:$0xff]  ;;  %v1121_v33 = vld [vmem:[#allocation7 + $0x18] sm:$0xff]  ;;  %vm906_vm2 = vcmask 254976  }
  0x35   :  { %v1105_v16 = vld [vmem:[#allocation7 + $0x20] sm:$0xff]  ;;  %v1125_v40 = vld [vmem:[#allocation7 + $0x30] sm:$0xff]  ;;  %v1127_v41 = vld [vmem:[#allocation7 + $0x38] sm:$0xff] }
  0x36   :  { %v1086_v2 = vsub.s32 0, %v77_v1  ;;  %v1088_v3 = vsub.s32 1, %v77_v1  ;;  %v1123_v37 = vld [vmem:[#allocation7 + $0x40] sm:$0xff]  ;;  %v1129_v43 = vld [vmem:[#allocation7 + $0x48] sm:$0xff]  ;;  %v105_v53 = vld [vmem:[#allocation6 + $0x8] sm:$0xff] }
  0x37   :  { %v101_v46 = vld [vmem:[#allocation6] sm:$0xff]  ;;  %v1139_v62 = vld [vmem:[#allocation7 + $0x50] sm:$0xff]  ;;  %v1141_v63 = vld [vmem:[#allocation7 + $0x58] sm:$0xff] }
  0x38   :  { %v175_v7 = vrot.slane %v1090_v4, %v1088_v3  ;;  %v156_v8 = vrot.slane %v1090_v4, %v1086_v2  ;;  %v79_v9 = vrot.slane %v74_v5, %v1086_v2  ;;  %v84_v11 = vrot.slane %v74_v5, %v1088_v3 }
  0x3a   :  { %177 = vbcast.lane.b32.xlu0 %v175_v7, 256  ;;  %158 = vbcast.lane.b32.xlu1 %v156_v8, 256  ;;  %v80_v10 = vmul.f32 %v79_v9, %v75_v6 }
  0x3c   :  { %v85_v12 = vadd.f32 %v84_v11, %v80_v10 }
  0x3e   :  { %181 = vbcast.lane.b32.xlu0 %v175_v7, 264  ;;  %162 = vbcast.lane.b32.xlu1 %v156_v8, 264  ;;  %v97_v13 = vrot.slane %v85_v12, %v1088_v3  ;;  %v90_v14 = vrot.slane %v85_v12, %v1086_v2 }
  0x42   :  { %185 = vbcast.lane.b32.xlu0 %v175_v7, 272  ;;  %189 = vbcast.lane.b32.xlu1 %v175_v7, 280 }
  0x46   :  { %166 = vbcast.lane.b32.xlu0 %v156_v8, 272  ;;  %99 = vbcast.lane.b32.xlu1 %v97_v13, 256 }
  0x4a   :  { %170 = vbcast.lane.b32.xlu1 %v156_v8, 280  ;;  %92 = vbcast.lane.b32.xlu0 %v90_v14, 256 }
  0xac   :  { %v178_v17 = vpop.permute.xlu0 %177  ;;  %v159_v18 = vpop.permute.xlu1 %158 }
  0xad   :  { %v195_v19 = vsub.f32 %v178_v17, %v1103_v15  ;;  %v191_v20 = vsub.f32 %v159_v18, %v1103_v15 }
  0xaf   :  { %v203_v22 = vmul.f32 %v195_v19, %v1105_v16  ;;  %v199_v29 = vmul.f32 %v191_v20, %v1105_v16 }
  0xb0   :  { %v182_v24 = vpop.permute.xlu0 %181  ;;  %v163_v25 = vpop.permute.xlu1 %162 }
  0xb1   :  { %v211_v26 = vmax.f32 %v203_v22, 0.0  ;;  %v196_v27 = vsub.f32 %v182_v24, %v1109_v21  ;;  %v192_v28 = vsub.f32 %v163_v25, %v1109_v21  ;;  %v207_v42 = vmax.f32 %v199_v29, 0.0  ;;  %v113_v22 = vld [vmem:[#allocation6 + $0x10] sm:$0xff] }
  0xb3   :  { %v204_v30 = vmul.f32 %v196_v27, %v1112_v23  ;;  %v200_v31 = vmul.f32 %v192_v28, %v1112_v23  ;;  %v219_v34 = vmin.f32 %v211_v26, 1.0  ;;  %v215_v58 = vmin.f32 %v207_v42, 1.0 }
  0xb4   :  { %v186_v35 = vpop.permute.xlu0 %185  ;;  %v190_v36 = vpop.permute.xlu1 %189 }
  0xb5   :  { %v212_v38 = vmax.f32 %v204_v30, 0.0  ;;  %v208_v39 = vmax.f32 %v200_v31, 0.0  ;;  %v197_v44 = vsub.f32 %v186_v35, %v1119_v32  ;;  %v198_v45 = vsub.f32 %v190_v36, %v1121_v33 }
  0xb6   :  { %v227_v48 = vmul.f32 %v219_v34, %v1123_v37  ;;  %v223_v17 = vmul.f32 %v215_v58, %v1123_v37 }
  0xb7   :  { %v220_v47 = vmin.f32 %v212_v38, 1.0  ;;  %v216_v49 = vmin.f32 %v208_v39, 1.0  ;;  %v205_v50 = vmul.f32 %v197_v44, %v1125_v40  ;;  %v206_v51 = vmul.f32 %v198_v45, %v1127_v41 }
  0xb8   :  { %v167_v52 = vpop.permute.xlu0 %166  ;;  %v100_v54 = vpop.permute.xlu1 %99  ;;  %v244_v5 = vsel %vm116_vm0, %v227_v48, 0.0  ;;  %v231_v36 = vsel %vm116_vm0, %v223_v17, 0.0 }
  0xb9   :  { %v228_v55 = vmul.f32 %v220_v47, %v1129_v43  ;;  %v193_v56 = vsub.f32 %v167_v52, %v1119_v32  ;;  %v103_v57 = vsub.f32 %v100_v54, %v101_v46  ;;  %v213_v59 = vmax.f32 %v205_v50, 0.0 }
  0xba   :  { %v214_v60 = vmax.f32 %v206_v51, 0.0  ;;  %v224_v6 = vmul.f32 %v216_v49, %v1129_v43 }
  0xbb   :  { %v245_v61 = vsel %vm116_vm0, %v228_v55, 0.0  ;;  %v201_v0 = vmul.f32 %v193_v56, %v1125_v40  ;;  %v107_v1 = vmul.f32 %v105_v53, %v103_v57  ;;  %v221_v7 = vmin.f32 %v213_v59, 1.0 }
  0xbc   :  { %v222_v8 = vmin.f32 %v214_v60, 1.0  ;;  %v171_v9 = vpop.permute.xlu1 %170  ;;  %v93_v10 = vpop.permute.xlu0 %92  ;;  %v246_v18 = vadd.f32 %v245_v61, %v244_v5  ;;  %v232_v28 = vsel %vm116_vm0, %v224_v6, 0.0  ;;  %v131_v61 = vld [vmem:[%s1391_s5] sm:$0x3]  ;;  %s1038_s5 = smov 96  }
  0xbd   :  { %v209_v11 = vmax.f32 %v201_v0, 0.0  ;;  %v109_v12 = vmax.f32 %v107_v1, 0.0  ;;  %v194_v13 = vsub.f32 %v171_v9, %v1121_v33  ;;  %v102_v14 = vsub.f32 %v93_v10, %v101_v46 }
  0xbe   :  { %v229_v19 = vmul.f32 %v221_v7, %v1139_v62  ;;  %v230_v20 = vmul.f32 %v222_v8, %v1141_v63  ;;  %v233_v47 = vadd.f32 %v232_v28, %v231_v36  ;;  %v135_v8 = vrot.slane %v131_v61, %v1088_v3 }
  0xbf   :  { %v217_v24 = vmin.f32 %v209_v11, 1.0  ;;  %v111_v25 = vmin.f32 %v109_v12, 1.0  ;;  %v202_v26 = vmul.f32 %v194_v13, %v1127_v41  ;;  %v106_v27 = vmul.f32 %v105_v53, %v102_v14 }
  0xc0   :  { %v247_v29 = vsel %vm116_vm0, %v229_v19, 0.0  ;;  %v249_v38 = vsel %vm116_vm0, %v230_v20, 0.0 }
  0xc1   :  { %v248_v30 = vadd.f32 %v247_v29, %v246_v18  ;;  %v225_v31 = vmul.f32 %v217_v24, %v1139_v62  ;;  %v115_v34 = vmul.f32 %v113_v22, %v111_v25  ;;  %v210_v35 = vmax.f32 %v202_v26, 0.0 }
  0xc2   :  { %v108_v39 = vmax.f32 %v106_v27, 0.0  ;;  %v1169_v27 = vrot.slane %v131_v61, %v1086_v2 }
  0xc3   :  { %v250_v42 = vadd.f32 %v249_v38, %v248_v30  ;;  %v234_v44 = vsel %vm116_vm0, %v225_v31, 0.0  ;;  %v124_v45 = vsel %vm116_vm0, %v115_v34, 0.0  ;;  %v218_v46 = vmin.f32 %v210_v35, 1.0 }
  0xc4   :  { %v125_v48 = vrot.slane %v124_v45, 4  ;;  %v110_v49 = vmin.f32 %v108_v39, 1.0  ;;  %v235_v52 = vadd.f32 %v234_v44, %v233_v47  ;;  %v265_v34 = vmul.f32 %v1169_v27, %v1090_v4 }
  0xc5   :  { %v251_v50 = vrot.slane %v250_v42, 4  ;;  %v226_v51 = vmul.f32 %v218_v46, %v1141_v63 }
  0xc6   :  { %v126_v53 = vadd.f32 %v125_v48, %v124_v45  ;;  %v114_v54 = vmul.f32 %v113_v22, %v110_v49 }
  0xc7   :  { %v252_v55 = vadd.f32 %v251_v50, %v250_v42  ;;  %v236_v56 = vsel %vm116_vm0, %v226_v51, 0.0  ;;  %v138_v42 = vadd.f32 0.016666668, %v131_v61 }
  0xc8   :  { %v127_v57 = vrot.slane %v126_v53, 2  ;;  %v237_v58 = vadd.f32 %v236_v56, %v235_v52  ;;  %v117_v59 = vsel %vm116_vm0, %v114_v54, 0.0 }
  0xc9   :  { %v253_v60 = vrot.slane %v252_v55, 2  ;;  %v118_v0 = vrot.slane %v117_v59, 4  ;;  %v1179_v44 = vrot.slane %v138_v42, %v1086_v2 }
  0xca   :  { %v128_v1 = vadd.f32 %v127_v57, %v126_v53  ;;  %v238_v5 = vrot.slane %v237_v58, 4 }
  0xcb   :  { %v119_v6 = vadd.f32 %v118_v0, %v117_v59  ;;  %v254_v7 = vadd.f32 %v253_v60, %v252_v55 }
  0xcc   :  { %v129_v9 = vrot.slane %v128_v1, 1  ;;  %v239_v10 = vadd.f32 %v238_v5, %v237_v58 }
  0xcd   :  { %v120_v11 = vrot.slane %v119_v6, 2  ;;  %v255_v12 = vrot.slane %v254_v7, 1 }
  0xce   :  { %v130_v13 = vadd.f32 %v129_v9, %v128_v1  ;;  %v240_v14 = vrot.slane %v239_v10, 2 }
  0xcf   :  { %v121_v17 = vadd.f32 %v120_v11, %v119_v6  ;;  %v256_v20 = vadd.f32 %v255_v12, %v254_v7 }
  0xd0   :  { %v1165_v18 = vadd.f32 %v135_v8, %v130_v13  ;;  %v241_v19 = vadd.f32 %v240_v14, %v239_v10 }
  0xd1   :  { %v122_v22 = vrot.slane %v121_v17, 1 }
  0xd2   :  { %v242_v24 = vrot.slane %v241_v19, 1  ;;  %v258_v25 = vadd.f32 %v256_v20, %v1165_v18 }
  0xd3   :  { %v123_v26 = vadd.f32 %v122_v22, %v121_v17 }
  0xd4   :  { %v243_v28 = vadd.f32 %v242_v24, %v241_v19  ;;  %v260_v30 = vmul.f32 0.016666668, %v258_v25 }
  0xd5   :  { %v1171_v29 = vadd.f32 %v135_v8, %v123_v26 }
  0xd6   :  { %v268_v36 = vrot.slane %v260_v30, 7 }
  0xd7   :  { %v257_v31 = vadd.f32 %v243_v28, %v1171_v29 }
  0xd9   :  { %v259_v35 = vmul.f32 0.016666668, %v257_v31 }
  0xdb   :  { %v270_v38 = vsel %vm269_vm1, %v268_v36, %v259_v35 }
  0xdc   :  { %277 = vrot.lane.b32.xlu0 %v270_v38, %s1038_s5  ;;  %v272_v39 = vadd.f32 %v270_v38, %v265_v34 }
 0x14e   :  { %v278_v45 = vpop.permute.xlu0 %277 }
 0x14f   :  { %v280_v46 = vadd.f32 %v278_v45, %v1179_v44 }
 0x151   :  { %922 = vrcp.f32 %v280_v46 }
 0x15e   :  { %v923_v47 = vpop.eup %922 }
 0x15f   :  { %v282_v48 = vmul.f32 %v923_v47, %v280_v46 }
 0x161   :  { %v283_v4 = vsub.f32 2.0, %v282_v48 }
 0x163   :  { %v284_v49 = vmul.f32 %v923_v47, %v283_v4 }
 0x165   :  { %v1182_v50 = vmul.f32 %v284_v49, %v272_v39 }
 0x167   :  { %v308_v51 = vrot.slane %v1182_v50, %v1088_v3  ;;  %v289_v52 = vrot.slane %v1182_v50, %v1086_v2 }
 0x169   :  { %314 = vbcast.lane.b32.xlu0 %v308_v51, 264  ;;  %310 = vbcast.lane.b32.xlu1 %v308_v51, 256 }
 0x16d   :  { %295 = vbcast.lane.b32.xlu0 %v289_v52, 264  ;;  %291 = vbcast.lane.b32.xlu1 %v289_v52, 256 }
 0x171   :  { %299 = vbcast.lane.b32.xlu0 %v289_v52, 272  ;;  %318 = vbcast.lane.b32.xlu1 %v308_v51, 272 }
 0x175   :  { %303 = vbcast.lane.b32.xlu0 %v289_v52, 280  ;;  %322 = vbcast.lane.b32.xlu1 %v308_v51, 280 }
 0x1db   :  { %v315_v53 = vpop.permute.xlu0 %314  ;;  %v311_v54 = vpop.permute.xlu1 %310 }
 0x1dc   :  { %v329_v55 = vsub.f32 %v315_v53, %v1109_v21  ;;  %v328_v56 = vsub.f32 %v311_v54, %v1103_v15 }
 0x1de   :  { %v337_v57 = vmul.f32 %v329_v55, %v1112_v23  ;;  %v336_v58 = vmul.f32 %v328_v56, %v1105_v16 }
 0x1df   :  { %v296_v59 = vpop.permute.xlu0 %295  ;;  %v292_v60 = vpop.permute.xlu1 %291 }
 0x1e0   :  { %v345_v61 = vmax.f32 %v337_v57, 0.0  ;;  %v344_v0 = vmax.f32 %v336_v58, 0.0  ;;  %v325_v1 = vsub.f32 %v296_v59, %v1109_v21  ;;  %v324_v5 = vsub.f32 %v292_v60, %v1103_v15 }
 0x1e2   :  { %v333_v6 = vmul.f32 %v325_v1, %v1112_v23  ;;  %v332_v7 = vmul.f32 %v324_v5, %v1105_v16  ;;  %v353_v8 = vmin.f32 %v345_v61, 1.0  ;;  %v352_v9 = vmin.f32 %v344_v0, 1.0 }
 0x1e3   :  { %v300_v10 = vpop.permute.xlu0 %299  ;;  %v319_v11 = vpop.permute.xlu1 %318 }
 0x1e4   :  { %v341_v12 = vmax.f32 %v333_v6, 0.0  ;;  %v340_v13 = vmax.f32 %v332_v7, 0.0  ;;  %v326_v14 = vsub.f32 %v300_v10, %v1119_v32  ;;  %v330_v17 = vsub.f32 %v319_v11, %v1119_v32 }
 0x1e5   :  { %v361_v22 = vmul.f32 %v353_v8, %v1129_v43  ;;  %v360_v24 = vmul.f32 %v352_v9, %v1123_v37 }
 0x1e6   :  { %v349_v19 = vmin.f32 %v341_v12, 1.0  ;;  %v348_v20 = vmin.f32 %v340_v13, 1.0  ;;  %v334_v25 = vmul.f32 %v326_v14, %v1125_v40  ;;  %v338_v26 = vmul.f32 %v330_v17, %v1125_v40 }
 0x1e7   :  { %v304_v28 = vpop.permute.xlu0 %303  ;;  %v323_v30 = vpop.permute.xlu1 %322  ;;  %v378_v46 = vsel %vm116_vm0, %v361_v22, 0.0  ;;  %v377_v47 = vsel %vm116_vm0, %v360_v24, 0.0 }
 0x1e8   :  { %v357_v31 = vmul.f32 %v349_v19, %v1129_v43  ;;  %v356_v34 = vmul.f32 %v348_v20, %v1123_v37  ;;  %v327_v35 = vsub.f32 %v304_v28, %v1121_v33  ;;  %v331_v36 = vsub.f32 %v323_v30, %v1121_v33 }
 0x1e9   :  { %v342_v38 = vmax.f32 %v334_v25, 0.0  ;;  %v346_v39 = vmax.f32 %v338_v26, 0.0  ;;  %v379_v58 = vadd.f32 %v378_v46, %v377_v47 }
 0x1ea   :  { %v335_v42 = vmul.f32 %v327_v35, %v1127_v41  ;;  %v339_v45 = vmul.f32 %v331_v36, %v1127_v41  ;;  %v365_v49 = vsel %vm116_vm0, %v357_v31, 0.0  ;;  %v364_v51 = vsel %vm116_vm0, %v356_v34, 0.0 }
 0x1eb   :  { %v350_v48 = vmin.f32 %v342_v38, 1.0  ;;  %v354_v4 = vmin.f32 %v346_v39, 1.0  ;;  %v366_v59 = vadd.f32 %v365_v49, %v364_v51  ;;  %v394_v38 = vmul.f32 %v1182_v50, %v1169_v27 }
 0x1ec   :  { %v343_v52 = vmax.f32 %v335_v42, 0.0  ;;  %v347_v53 = vmax.f32 %v339_v45, 0.0 }
 0x1ed   :  { %v358_v54 = vmul.f32 %v350_v48, %v1139_v62  ;;  %v362_v55 = vmul.f32 %v354_v4, %v1139_v62 }
 0x1ee   :  { %v351_v56 = vmin.f32 %v343_v52, 1.0  ;;  %v355_v57 = vmin.f32 %v347_v53, 1.0 }
 0x1ef   :  { %v367_v60 = vsel %vm116_vm0, %v358_v54, 0.0  ;;  %v380_v61 = vsel %vm116_vm0, %v362_v55, 0.0 }
 0x1f0   :  { %v359_v0 = vmul.f32 %v351_v56, %v1141_v63  ;;  %v363_v1 = vmul.f32 %v355_v57, %v1141_v63  ;;  %v368_v5 = vadd.f32 %v367_v60, %v366_v59  ;;  %v381_v6 = vadd.f32 %v380_v61, %v379_v58 }
 0x1f2   :  { %v369_v7 = vsel %vm116_vm0, %v359_v0, 0.0  ;;  %v382_v8 = vsel %vm116_vm0, %v363_v1, 0.0 }
 0x1f3   :  { %v370_v9 = vadd.f32 %v369_v7, %v368_v5  ;;  %v383_v10 = vadd.f32 %v382_v8, %v381_v6 }
 0x1f5   :  { %v371_v11 = vrot.slane %v370_v9, 4  ;;  %v384_v12 = vrot.slane %v383_v10, 4 }
 0x1f7   :  { %v372_v13 = vadd.f32 %v371_v11, %v370_v9  ;;  %v385_v14 = vadd.f32 %v384_v12, %v383_v10 }
 0x1f9   :  { %v373_v17 = vrot.slane %v372_v13, 2  ;;  %v386_v19 = vrot.slane %v385_v14, 2 }
 0x1fb   :  { %v374_v20 = vadd.f32 %v373_v17, %v372_v13  ;;  %v387_v22 = vadd.f32 %v386_v19, %v385_v14 }
 0x1fd   :  { %v375_v24 = vrot.slane %v374_v20, 1  ;;  %v388_v25 = vrot.slane %v387_v22, 1 }
 0x1ff   :  { %v376_v26 = vadd.f32 %v375_v24, %v374_v20  ;;  %v389_v28 = vadd.f32 %v388_v25, %v387_v22 }
 0x201   :  { %v390_v30 = vadd.f32 %v376_v26, %v1171_v29  ;;  %v391_v31 = vadd.f32 %v389_v28, %v1165_v18 }
 0x203   :  { %v393_v34 = vmul.f32 0.016666668, %v391_v31  ;;  %v392_v35 = vmul.f32 0.016666668, %v390_v30 }
 0x205   :  { %v397_v36 = vrot.slane %v393_v34, 7 }
 0x207   :  { %v398_v39 = vsel %vm269_vm1, %v397_v36, %v392_v35 }
 0x208   :  { %401 = vrot.lane.b32.xlu1 %v398_v39, %s1038_s5  ;;  %v400_v42 = vadd.f32 %v398_v39, %v394_v38 }
 0x27a   :  { %v402_v45 = vpop.permute.xlu1 %401 }
 0x27b   :  { %v404_v46 = vadd.f32 %v402_v45, %v1179_v44 }
 0x27d   :  { %924 = vrcp.f32 %v404_v46 }
 0x28a   :  { %v925_v47 = vpop.eup %924 }
 0x28b   :  { %v406_v48 = vmul.f32 %v925_v47, %v404_v46 }
 0x28d   :  { %v407_v4 = vsub.f32 2.0, %v406_v48 }
 0x28f   :  { %v408_v49 = vmul.f32 %v925_v47, %v407_v4 }
 0x291   :  { %v1227_v51 = vmul.f32 %v408_v49, %v400_v42 }
 0x293   :  { %v432_v52 = vrot.slane %v1227_v51, %v1088_v3  ;;  %v413_v50 = vrot.slane %v1227_v51, %v1086_v2 }
 0x295   :  { %438 = vbcast.lane.b32.xlu1 %v432_v52, 264  ;;  %434 = vbcast.lane.b32.xlu0 %v432_v52, 256 }
 0x299   :  { %419 = vbcast.lane.b32.xlu1 %v413_v50, 264  ;;  %415 = vbcast.lane.b32.xlu0 %v413_v50, 256 }
 0x29d   :  { %423 = vbcast.lane.b32.xlu1 %v413_v50, 272  ;;  %442 = vbcast.lane.b32.xlu0 %v432_v52, 272 }
 0x2a1   :  { %427 = vbcast.lane.b32.xlu1 %v413_v50, 280  ;;  %446 = vbcast.lane.b32.xlu0 %v432_v52, 280 }
 0x307   :  { %v439_v53 = vpop.permute.xlu1 %438  ;;  %v435_v54 = vpop.permute.xlu0 %434 }
 0x308   :  { %v453_v55 = vsub.f32 %v439_v53, %v1109_v21  ;;  %v452_v56 = vsub.f32 %v435_v54, %v1103_v15 }
 0x30a   :  { %v461_v57 = vmul.f32 %v453_v55, %v1112_v23  ;;  %v460_v58 = vmul.f32 %v452_v56, %v1105_v16 }
 0x30b   :  { %v420_v59 = vpop.permute.xlu1 %419  ;;  %v416_v60 = vpop.permute.xlu0 %415 }
 0x30c   :  { %v469_v61 = vmax.f32 %v461_v57, 0.0  ;;  %v468_v0 = vmax.f32 %v460_v58, 0.0  ;;  %v449_v1 = vsub.f32 %v420_v59, %v1109_v21  ;;  %v448_v5 = vsub.f32 %v416_v60, %v1103_v15 }
 0x30e   :  { %v457_v6 = vmul.f32 %v449_v1, %v1112_v23  ;;  %v456_v7 = vmul.f32 %v448_v5, %v1105_v16  ;;  %v477_v8 = vmin.f32 %v469_v61, 1.0  ;;  %v476_v9 = vmin.f32 %v468_v0, 1.0 }
 0x30f   :  { %v424_v10 = vpop.permute.xlu1 %423  ;;  %v443_v11 = vpop.permute.xlu0 %442 }
 0x310   :  { %v465_v12 = vmax.f32 %v457_v6, 0.0  ;;  %v464_v13 = vmax.f32 %v456_v7, 0.0  ;;  %v450_v14 = vsub.f32 %v424_v10, %v1119_v32  ;;  %v454_v17 = vsub.f32 %v443_v11, %v1119_v32 }
 0x311   :  { %v485_v22 = vmul.f32 %v477_v8, %v1129_v43  ;;  %v484_v24 = vmul.f32 %v476_v9, %v1123_v37 }
 0x312   :  { %v473_v19 = vmin.f32 %v465_v12, 1.0  ;;  %v472_v20 = vmin.f32 %v464_v13, 1.0  ;;  %v458_v25 = vmul.f32 %v450_v14, %v1125_v40  ;;  %v462_v26 = vmul.f32 %v454_v17, %v1125_v40 }
 0x313   :  { %v428_v28 = vpop.permute.xlu1 %427  ;;  %v447_v30 = vpop.permute.xlu0 %446  ;;  %v502_v46 = vsel %vm116_vm0, %v485_v22, 0.0  ;;  %v501_v47 = vsel %vm116_vm0, %v484_v24, 0.0 }
 0x314   :  { %v481_v31 = vmul.f32 %v473_v19, %v1129_v43  ;;  %v480_v34 = vmul.f32 %v472_v20, %v1123_v37  ;;  %v451_v35 = vsub.f32 %v428_v28, %v1121_v33  ;;  %v455_v36 = vsub.f32 %v447_v30, %v1121_v33 }
 0x315   :  { %v466_v38 = vmax.f32 %v458_v25, 0.0  ;;  %v470_v39 = vmax.f32 %v462_v26, 0.0  ;;  %v503_v58 = vadd.f32 %v502_v46, %v501_v47 }
 0x316   :  { %v459_v42 = vmul.f32 %v451_v35, %v1127_v41  ;;  %v463_v45 = vmul.f32 %v455_v36, %v1127_v41  ;;  %v489_v49 = vsel %vm116_vm0, %v481_v31, 0.0  ;;  %v488_v52 = vsel %vm116_vm0, %v480_v34, 0.0 }
 0x317   :  { %v474_v48 = vmin.f32 %v466_v38, 1.0  ;;  %v478_v4 = vmin.f32 %v470_v39, 1.0  ;;  %v490_v59 = vadd.f32 %v489_v49, %v488_v52  ;;  %v518_v38 = vmul.f32 %v1227_v51, %v1169_v27 }
 0x318   :  { %v467_v50 = vmax.f32 %v459_v42, 0.0  ;;  %v471_v53 = vmax.f32 %v463_v45, 0.0 }
 0x319   :  { %v482_v54 = vmul.f32 %v474_v48, %v1139_v62  ;;  %v486_v55 = vmul.f32 %v478_v4, %v1139_v62 }
 0x31a   :  { %v475_v56 = vmin.f32 %v467_v50, 1.0  ;;  %v479_v57 = vmin.f32 %v471_v53, 1.0 }
 0x31b   :  { %v491_v60 = vsel %vm116_vm0, %v482_v54, 0.0  ;;  %v504_v61 = vsel %vm116_vm0, %v486_v55, 0.0 }
 0x31c   :  { %v483_v0 = vmul.f32 %v475_v56, %v1141_v63  ;;  %v487_v1 = vmul.f32 %v479_v57, %v1141_v63  ;;  %v492_v5 = vadd.f32 %v491_v60, %v490_v59  ;;  %v505_v6 = vadd.f32 %v504_v61, %v503_v58 }
 0x31e   :  { %v493_v7 = vsel %vm116_vm0, %v483_v0, 0.0  ;;  %v506_v8 = vsel %vm116_vm0, %v487_v1, 0.0 }
 0x31f   :  { %v494_v9 = vadd.f32 %v493_v7, %v492_v5  ;;  %v507_v10 = vadd.f32 %v506_v8, %v505_v6 }
 0x321   :  { %v495_v11 = vrot.slane %v494_v9, 4  ;;  %v508_v12 = vrot.slane %v507_v10, 4 }
 0x323   :  { %v496_v13 = vadd.f32 %v495_v11, %v494_v9  ;;  %v509_v14 = vadd.f32 %v508_v12, %v507_v10 }
 0x325   :  { %v497_v17 = vrot.slane %v496_v13, 2  ;;  %v510_v19 = vrot.slane %v509_v14, 2 }
 0x327   :  { %v498_v20 = vadd.f32 %v497_v17, %v496_v13  ;;  %v511_v22 = vadd.f32 %v510_v19, %v509_v14 }
 0x329   :  { %v499_v24 = vrot.slane %v498_v20, 1  ;;  %v512_v25 = vrot.slane %v511_v22, 1 }
 0x32b   :  { %v500_v26 = vadd.f32 %v499_v24, %v498_v20  ;;  %v513_v28 = vadd.f32 %v512_v25, %v511_v22 }
 0x32d   :  { %v514_v30 = vadd.f32 %v500_v26, %v1171_v29  ;;  %v515_v31 = vadd.f32 %v513_v28, %v1165_v18 }
 0x32f   :  { %v517_v34 = vmul.f32 0.016666668, %v515_v31  ;;  %v516_v35 = vmul.f32 0.016666668, %v514_v30 }
 0x331   :  { %v521_v36 = vrot.slane %v517_v34, 7 }
 0x333   :  { %v522_v39 = vsel %vm269_vm1, %v521_v36, %v516_v35 }
 0x334   :  { %525 = vrot.lane.b32.xlu0 %v522_v39, %s1038_s5  ;;  %v524_v42 = vadd.f32 %v522_v39, %v518_v38 }
 0x3a6   :  { %v526_v45 = vpop.permute.xlu0 %525 }
 0x3a7   :  { %v528_v46 = vadd.f32 %v526_v45, %v1179_v44 }
 0x3a9   :  { %926 = vrcp.f32 %v528_v46 }
 0x3b6   :  { %v927_v47 = vpop.eup %926 }
 0x3b7   :  { %v530_v48 = vmul.f32 %v927_v47, %v528_v46 }
 0x3b9   :  { %v531_v4 = vsub.f32 2.0, %v530_v48 }
 0x3bb   :  { %v532_v49 = vmul.f32 %v927_v47, %v531_v4 }
 0x3bd   :  { %v1272_v52 = vmul.f32 %v532_v49, %v524_v42 }
 0x3bf   :  { %v556_v50 = vrot.slane %v1272_v52, %v1088_v3  ;;  %v537_v51 = vrot.slane %v1272_v52, %v1086_v2 }
 0x3c1   :  { %562 = vbcast.lane.b32.xlu0 %v556_v50, 264  ;;  %558 = vbcast.lane.b32.xlu1 %v556_v50, 256 }
 0x3c5   :  { %543 = vbcast.lane.b32.xlu0 %v537_v51, 264  ;;  %539 = vbcast.lane.b32.xlu1 %v537_v51, 256 }
 0x3c9   :  { %547 = vbcast.lane.b32.xlu0 %v537_v51, 272  ;;  %566 = vbcast.lane.b32.xlu1 %v556_v50, 272 }
 0x3cd   :  { %551 = vbcast.lane.b32.xlu0 %v537_v51, 280  ;;  %570 = vbcast.lane.b32.xlu1 %v556_v50, 280 }
 0x433   :  { %v563_v53 = vpop.permute.xlu0 %562  ;;  %v559_v54 = vpop.permute.xlu1 %558 }
 0x434   :  { %v577_v55 = vsub.f32 %v563_v53, %v1109_v21  ;;  %v576_v56 = vsub.f32 %v559_v54, %v1103_v15 }
 0x436   :  { %v585_v57 = vmul.f32 %v577_v55, %v1112_v23  ;;  %v584_v58 = vmul.f32 %v576_v56, %v1105_v16 }
 0x437   :  { %v544_v59 = vpop.permute.xlu0 %543  ;;  %v540_v60 = vpop.permute.xlu1 %539 }
 0x438   :  { %v593_v61 = vmax.f32 %v585_v57, 0.0  ;;  %v592_v0 = vmax.f32 %v584_v58, 0.0  ;;  %v573_v1 = vsub.f32 %v544_v59, %v1109_v21  ;;  %v572_v5 = vsub.f32 %v540_v60, %v1103_v15 }
 0x43a   :  { %v581_v6 = vmul.f32 %v573_v1, %v1112_v23  ;;  %v580_v7 = vmul.f32 %v572_v5, %v1105_v16  ;;  %v601_v8 = vmin.f32 %v593_v61, 1.0  ;;  %v600_v9 = vmin.f32 %v592_v0, 1.0 }
 0x43b   :  { %v548_v10 = vpop.permute.xlu0 %547  ;;  %v567_v11 = vpop.permute.xlu1 %566 }
 0x43c   :  { %v589_v12 = vmax.f32 %v581_v6, 0.0  ;;  %v588_v13 = vmax.f32 %v580_v7, 0.0  ;;  %v574_v14 = vsub.f32 %v548_v10, %v1119_v32  ;;  %v578_v17 = vsub.f32 %v567_v11, %v1119_v32 }
 0x43d   :  { %v609_v22 = vmul.f32 %v601_v8, %v1129_v43  ;;  %v608_v24 = vmul.f32 %v600_v9, %v1123_v37 }
 0x43e   :  { %v597_v19 = vmin.f32 %v589_v12, 1.0  ;;  %v596_v20 = vmin.f32 %v588_v13, 1.0  ;;  %v582_v25 = vmul.f32 %v574_v14, %v1125_v40  ;;  %v586_v26 = vmul.f32 %v578_v17, %v1125_v40 }
 0x43f   :  { %v552_v28 = vpop.permute.xlu0 %551  ;;  %v571_v30 = vpop.permute.xlu1 %570  ;;  %v626_v46 = vsel %vm116_vm0, %v609_v22, 0.0  ;;  %v625_v47 = vsel %vm116_vm0, %v608_v24, 0.0 }
 0x440   :  { %v605_v31 = vmul.f32 %v597_v19, %v1129_v43  ;;  %v604_v34 = vmul.f32 %v596_v20, %v1123_v37  ;;  %v575_v35 = vsub.f32 %v552_v28, %v1121_v33  ;;  %v579_v36 = vsub.f32 %v571_v30, %v1121_v33 }
 0x441   :  { %v590_v38 = vmax.f32 %v582_v25, 0.0  ;;  %v594_v39 = vmax.f32 %v586_v26, 0.0  ;;  %v627_v58 = vadd.f32 %v626_v46, %v625_v47 }
 0x442   :  { %v583_v42 = vmul.f32 %v575_v35, %v1127_v41  ;;  %v587_v45 = vmul.f32 %v579_v36, %v1127_v41  ;;  %v613_v49 = vsel %vm116_vm0, %v605_v31, 0.0  ;;  %v612_v50 = vsel %vm116_vm0, %v604_v34, 0.0 }
 0x443   :  { %v598_v48 = vmin.f32 %v590_v38, 1.0  ;;  %v602_v4 = vmin.f32 %v594_v39, 1.0  ;;  %v614_v59 = vadd.f32 %v613_v49, %v612_v50  ;;  %v642_v38 = vmul.f32 %v1272_v52, %v1169_v27 }
 0x444   :  { %v591_v51 = vmax.f32 %v583_v42, 0.0  ;;  %v595_v53 = vmax.f32 %v587_v45, 0.0 }
 0x445   :  { %v606_v54 = vmul.f32 %v598_v48, %v1139_v62  ;;  %v610_v55 = vmul.f32 %v602_v4, %v1139_v62 }
 0x446   :  { %v599_v56 = vmin.f32 %v591_v51, 1.0  ;;  %v603_v57 = vmin.f32 %v595_v53, 1.0 }
 0x447   :  { %v615_v60 = vsel %vm116_vm0, %v606_v54, 0.0  ;;  %v628_v61 = vsel %vm116_vm0, %v610_v55, 0.0 }
 0x448   :  { %v607_v0 = vmul.f32 %v599_v56, %v1141_v63  ;;  %v611_v1 = vmul.f32 %v603_v57, %v1141_v63  ;;  %v616_v5 = vadd.f32 %v615_v60, %v614_v59  ;;  %v629_v6 = vadd.f32 %v628_v61, %v627_v58 }
 0x44a   :  { %v617_v7 = vsel %vm116_vm0, %v607_v0, 0.0  ;;  %v630_v8 = vsel %vm116_vm0, %v611_v1, 0.0 }
 0x44b   :  { %v618_v9 = vadd.f32 %v617_v7, %v616_v5  ;;  %v631_v10 = vadd.f32 %v630_v8, %v629_v6 }
 0x44d   :  { %v619_v11 = vrot.slane %v618_v9, 4  ;;  %v632_v12 = vrot.slane %v631_v10, 4 }
 0x44f   :  { %v620_v13 = vadd.f32 %v619_v11, %v618_v9  ;;  %v633_v14 = vadd.f32 %v632_v12, %v631_v10 }
 0x451   :  { %v621_v17 = vrot.slane %v620_v13, 2  ;;  %v634_v19 = vrot.slane %v633_v14, 2 }
 0x453   :  { %v622_v20 = vadd.f32 %v621_v17, %v620_v13  ;;  %v635_v22 = vadd.f32 %v634_v19, %v633_v14 }
 0x455   :  { %v623_v24 = vrot.slane %v622_v20, 1  ;;  %v636_v25 = vrot.slane %v635_v22, 1 }
 0x457   :  { %v624_v26 = vadd.f32 %v623_v24, %v622_v20  ;;  %v637_v28 = vadd.f32 %v636_v25, %v635_v22 }
 0x459   :  { %v638_v30 = vadd.f32 %v624_v26, %v1171_v29  ;;  %v639_v31 = vadd.f32 %v637_v28, %v1165_v18 }
 0x45b   :  { %v641_v34 = vmul.f32 0.016666668, %v639_v31  ;;  %v640_v35 = vmul.f32 0.016666668, %v638_v30 }
 0x45d   :  { %v645_v36 = vrot.slane %v641_v34, 7 }
 0x45f   :  { %v646_v39 = vsel %vm269_vm1, %v645_v36, %v640_v35 }
 0x460   :  { %649 = vrot.lane.b32.xlu1 %v646_v39, %s1038_s5  ;;  %v648_v42 = vadd.f32 %v646_v39, %v642_v38 }
 0x4d2   :  { %v650_v45 = vpop.permute.xlu1 %649 }
 0x4d3   :  { %v652_v46 = vadd.f32 %v650_v45, %v1179_v44 }
 0x4d5   :  { %928 = vrcp.f32 %v652_v46 }
 0x4e2   :  { %v929_v47 = vpop.eup %928 }
 0x4e3   :  { %v654_v48 = vmul.f32 %v929_v47, %v652_v46 }
 0x4e5   :  { %v655_v4 = vsub.f32 2.0, %v654_v48 }
 0x4e7   :  { %v656_v49 = vmul.f32 %v929_v47, %v655_v4 }
 0x4e9   :  { %v1317_v50 = vmul.f32 %v656_v49, %v648_v42 }
 0x4eb   :  { %v680_v51 = vrot.slane %v1317_v50, %v1088_v3  ;;  %v661_v52 = vrot.slane %v1317_v50, %v1086_v2 }
 0x4ed   :  { %686 = vbcast.lane.b32.xlu1 %v680_v51, 264  ;;  %682 = vbcast.lane.b32.xlu0 %v680_v51, 256 }
 0x4f1   :  { %667 = vbcast.lane.b32.xlu1 %v661_v52, 264  ;;  %663 = vbcast.lane.b32.xlu0 %v661_v52, 256 }
 0x4f5   :  { %671 = vbcast.lane.b32.xlu1 %v661_v52, 272  ;;  %690 = vbcast.lane.b32.xlu0 %v680_v51, 272 }
 0x4f9   :  { %675 = vbcast.lane.b32.xlu1 %v661_v52, 280  ;;  %694 = vbcast.lane.b32.xlu0 %v680_v51, 280 }
 0x55f   :  { %v687_v53 = vpop.permute.xlu1 %686  ;;  %v683_v54 = vpop.permute.xlu0 %682 }
 0x560   :  { %v701_v55 = vsub.f32 %v687_v53, %v1109_v21  ;;  %v700_v56 = vsub.f32 %v683_v54, %v1103_v15 }
 0x562   :  { %v709_v57 = vmul.f32 %v701_v55, %v1112_v23  ;;  %v708_v58 = vmul.f32 %v700_v56, %v1105_v16 }
 0x563   :  { %v668_v59 = vpop.permute.xlu1 %667  ;;  %v664_v60 = vpop.permute.xlu0 %663 }
 0x564   :  { %v717_v61 = vmax.f32 %v709_v57, 0.0  ;;  %v716_v0 = vmax.f32 %v708_v58, 0.0  ;;  %v697_v1 = vsub.f32 %v668_v59, %v1109_v21  ;;  %v696_v5 = vsub.f32 %v664_v60, %v1103_v15 }
 0x566   :  { %v705_v6 = vmul.f32 %v697_v1, %v1112_v23  ;;  %v704_v7 = vmul.f32 %v696_v5, %v1105_v16  ;;  %v725_v8 = vmin.f32 %v717_v61, 1.0  ;;  %v724_v9 = vmin.f32 %v716_v0, 1.0 }
 0x567   :  { %v672_v10 = vpop.permute.xlu1 %671  ;;  %v691_v11 = vpop.permute.xlu0 %690 }
 0x568   :  { %v713_v12 = vmax.f32 %v705_v6, 0.0  ;;  %v712_v13 = vmax.f32 %v704_v7, 0.0  ;;  %v698_v14 = vsub.f32 %v672_v10, %v1119_v32  ;;  %v702_v17 = vsub.f32 %v691_v11, %v1119_v32 }
 0x569   :  { %v733_v21 = vmul.f32 %v725_v8, %v1129_v43  ;;  %v732_v15 = vmul.f32 %v724_v9, %v1123_v37 }
 0x56a   :  { %v721_v19 = vmin.f32 %v713_v12, 1.0  ;;  %v720_v20 = vmin.f32 %v712_v13, 1.0  ;;  %v706_v23 = vmul.f32 %v698_v14, %v1125_v40  ;;  %v710_v16 = vmul.f32 %v702_v17, %v1125_v40 }
 0x56b   :  { %v676_v22 = vpop.permute.xlu1 %675  ;;  %v695_v24 = vpop.permute.xlu0 %694  ;;  %v750_v36 = vsel %vm116_vm0, %v733_v21, 0.0  ;;  %v749_v40 = vsel %vm116_vm0, %v732_v15, 0.0 }
 0x56c   :  { %v729_v25 = vmul.f32 %v721_v19, %v1129_v43  ;;  %v728_v26 = vmul.f32 %v720_v20, %v1123_v37  ;;  %v699_v28 = vsub.f32 %v676_v22, %v1121_v33  ;;  %v703_v32 = vsub.f32 %v695_v24, %v1121_v33 }
 0x56d   :  { %v714_v30 = vmax.f32 %v706_v23, 0.0  ;;  %v718_v31 = vmax.f32 %v710_v16, 0.0  ;;  %v751_v4 = vadd.f32 %v750_v36, %v749_v40  ;;  %v766_v19 = vmul.f32 %v1317_v50, %v1169_v27  ;;  %v936_v40 = vld [vmem:[#allocation7 + $0x28] sm:$0xff] }
 0x56e   :  { %v707_v34 = vmul.f32 %v699_v28, %v1127_v41  ;;  %v711_v35 = vmul.f32 %v703_v32, %v1127_v41  ;;  %v737_v43 = vsel %vm116_vm0, %v729_v25, 0.0  ;;  %v736_v37 = vsel %vm116_vm0, %v728_v26, 0.0 }
 0x56f   :  { %v722_v38 = vmin.f32 %v714_v30, 1.0  ;;  %v726_v39 = vmin.f32 %v718_v31, 1.0  ;;  %v738_v41 = vadd.f32 %v737_v43, %v736_v37  ;;  %v934_v31 = vld [vmem:[#allocation7 + $0x8] sm:$0xff] }
 0x570   :  { %v715_v42 = vmax.f32 %v707_v34, 0.0  ;;  %v719_v45 = vmax.f32 %v711_v35, 0.0  ;;  %v935_v35 = vld [vmem:[#allocation7] sm:$0xff] }
 0x571   :  { %v730_v33 = vmul.f32 %v722_v38, %v1139_v62  ;;  %v734_v46 = vmul.f32 %v726_v39, %v1139_v62 }
 0x572   :  { %v723_v47 = vmin.f32 %v715_v42, 1.0  ;;  %v727_v48 = vmin.f32 %v719_v45, 1.0 }
 0x573   :  { %v739_v49 = vsel %vm116_vm0, %v730_v33, 0.0  ;;  %v752_v51 = vsel %vm116_vm0, %v734_v46, 0.0 }
 0x574   :  { %v731_v52 = vmul.f32 %v723_v47, %v1141_v63  ;;  %v735_v53 = vmul.f32 %v727_v48, %v1141_v63  ;;  %v740_v54 = vadd.f32 %v739_v49, %v738_v41  ;;  %v753_v55 = vadd.f32 %v752_v51, %v751_v4 }
 0x576   :  { %v741_v56 = vsel %vm116_vm0, %v731_v52, 0.0  ;;  %v754_v57 = vsel %vm116_vm0, %v735_v53, 0.0  ;;  %v938_v53 = vld [vmem:[#allocation7 + $0x10] sm:$0xff] }
 0x577   :  { %v742_v58 = vadd.f32 %v741_v56, %v740_v54  ;;  %v755_v62 = vadd.f32 %v754_v57, %v753_v55 }
 0x579   :  { %v743_v59 = vrot.slane %v742_v58, 4  ;;  %v756_v60 = vrot.slane %v755_v62, 4 }
 0x57b   :  { %v744_v61 = vadd.f32 %v743_v59, %v742_v58  ;;  %v757_v0 = vadd.f32 %v756_v60, %v755_v62  ;;  %v939_v58 = vld [vmem:[#allocation7 + $0x48] sm:$0xff]  ;;  %v940_v59 = vld [vmem:[#allocation7 + $0x40] sm:$0xff] }
 0x57d   :  { %v745_v1 = vrot.slane %v744_v61, 2  ;;  %v758_v5 = vrot.slane %v757_v0, 2 }
 0x57f   :  { %v746_v6 = vadd.f32 %v745_v1, %v744_v61  ;;  %v759_v7 = vadd.f32 %v758_v5, %v757_v0  ;;  %v941_v61 = vld [vmem:[#allocation7 + $0x30] sm:$0xff] }
 0x581   :  { %v747_v8 = vrot.slane %v746_v6, 1  ;;  %v760_v9 = vrot.slane %v759_v7, 1 }
 0x583   :  { %v748_v10 = vadd.f32 %v747_v8, %v746_v6  ;;  %v761_v63 = vadd.f32 %v760_v9, %v759_v7  ;;  %v942_v9 = vld [vmem:[#allocation7 + $0x18] sm:$0xff] }
 0x585   :  { %v762_v11 = vadd.f32 %v748_v10, %v1171_v29  ;;  %v763_v12 = vadd.f32 %v761_v63, %v1165_v18 }
 0x587   :  { %v765_v13 = vmul.f32 0.016666668, %v763_v12  ;;  %v764_v14 = vmul.f32 0.016666668, %v762_v11 }
 0x589   :  { %v769_v17 = vrot.slane %v765_v13, 7  ;;  %v943_v13 = vld [vmem:[#allocation7 + $0x38] sm:$0xff] }
 0x58b   :  { %v770_v20 = vsel %vm269_vm1, %v769_v17, %v764_v14 }
 0x58c   :  { %773 = vrot.lane.b32.xlu0 %v770_v20, %s1038_s5  ;;  %v772_v21 = vadd.f32 %v770_v20, %v766_v19 }
 0x5fe   :  { %v774_v15 = vpop.permute.xlu0 %773 }
 0x5ff   :  { %v776_v23 = vadd.f32 %v774_v15, %v1179_v44 }
 0x601   :  { %930 = vrcp.f32 %v776_v23 }
 0x60e   :  { %v931_v16 = vpop.eup %930 }
 0x60f   :  { %v778_v22 = vmul.f32 %v931_v16, %v776_v23 }
 0x611   :  { %v779_v24 = vsub.f32 2.0, %v778_v22 }
 0x613   :  { %v780_v25 = vmul.f32 %v931_v16, %v779_v24 }
 0x615   :  { %v1362_v26 = vmul.f32 %v780_v25, %v772_v21  ;;  %v944_v25 = vld [vmem:[#allocation7 + $0x50] sm:$0xff] }
 0x617   :  { %v804_v28 = vrot.slane %v1362_v26, %v1088_v3  ;;  %v785_v50 = vrot.slane %v1362_v26, %v1086_v2  ;;  %v937_v3 = vld [vmem:[#allocation7 + $0x20] sm:$0xff] }
 0x619   :  { %810 = vbcast.lane.b32.xlu0 %v804_v28, 264  ;;  %806 = vbcast.lane.b32.xlu1 %v804_v28, 256 }
 0x61d   :  { %791 = vbcast.lane.b32.xlu0 %v785_v50, 264  ;;  %787 = vbcast.lane.b32.xlu1 %v785_v50, 256 }
 0x621   :  { %795 = vbcast.lane.b32.xlu0 %v785_v50, 272  ;;  %814 = vbcast.lane.b32.xlu1 %v804_v28, 272 }
 0x625   :  { %799 = vbcast.lane.b32.xlu0 %v785_v50, 280  ;;  %818 = vbcast.lane.b32.xlu1 %v804_v28, 280 }
 0x68b   :  { %v811_v32 = vpop.permute.xlu0 %810  ;;  %v807_v30 = vpop.permute.xlu1 %806 }
 0x68c   :  { %v825_v34 = vsub.f32 %v811_v32, %v934_v31  ;;  %v824_v36 = vsub.f32 %v807_v30, %v935_v35 }
 0x68e   :  { %v833_v38 = vmul.f32 %v936_v40, %v825_v34  ;;  %v832_v39 = vmul.f32 %v937_v3, %v824_v36 }
 0x68f   :  { %v792_v43 = vpop.permute.xlu0 %791  ;;  %v788_v37 = vpop.permute.xlu1 %787 }
 0x690   :  { %v841_v42 = vmax.f32 %v833_v38, 0.0  ;;  %v840_v2 = vmax.f32 %v832_v39, 0.0  ;;  %v821_v45 = vsub.f32 %v792_v43, %v934_v31  ;;  %v820_v33 = vsub.f32 %v788_v37, %v935_v35 }
 0x692   :  { %v829_v46 = vmul.f32 %v936_v40, %v821_v45  ;;  %v828_v47 = vmul.f32 %v937_v3, %v820_v33  ;;  %v849_v48 = vmin.f32 %v841_v42, 1.0  ;;  %v848_v4 = vmin.f32 %v840_v2, 1.0  ;;  %v945_v40 = vld [vmem:[#allocation7 + $0x58] sm:$0xff] }
 0x693   :  { %v796_v41 = vpop.permute.xlu0 %795  ;;  %v815_v49 = vpop.permute.xlu1 %814 }
 0x694   :  { %v837_v51 = vmax.f32 %v829_v46, 0.0  ;;  %v836_v52 = vmax.f32 %v828_v47, 0.0  ;;  %v822_v54 = vsub.f32 %v796_v41, %v938_v53  ;;  %v826_v55 = vsub.f32 %v815_v49, %v938_v53 }
 0x695   :  { %v857_v62 = vmul.f32 %v939_v58, %v849_v48  ;;  %v856_v60 = vmul.f32 %v940_v59, %v848_v4 }
 0x696   :  { %v845_v56 = vmin.f32 %v837_v51, 1.0  ;;  %v844_v57 = vmin.f32 %v836_v52, 1.0  ;;  %v830_v0 = vmul.f32 %v941_v61, %v822_v54  ;;  %v834_v1 = vmul.f32 %v941_v61, %v826_v55 }
 0x697   :  { %v800_v5 = vpop.permute.xlu0 %799  ;;  %v819_v6 = vpop.permute.xlu1 %818  ;;  %v874_v19 = vsel %vm116_vm0, %v857_v62, 0.0  ;;  %v873_v20 = vsel %vm116_vm0, %v856_v60, 0.0  ;;  %v890_v60 = vmul.f32 %v1362_v26, %v1169_v27 }
 0x698   :  { %v853_v7 = vmul.f32 %v939_v58, %v845_v56  ;;  %v852_v8 = vmul.f32 %v940_v59, %v844_v57  ;;  %v823_v10 = vsub.f32 %v800_v5, %v942_v9  ;;  %v827_v63 = vsub.f32 %v819_v6, %v942_v9 }
 0x699   :  { %v838_v11 = vmax.f32 %v830_v0, 0.0  ;;  %v842_v12 = vmax.f32 %v834_v1, 0.0  ;;  %v875_v31 = vadd.f32 %v874_v19, %v873_v20 }
 0x69a   :  { %v831_v14 = vmul.f32 %v943_v13, %v823_v10  ;;  %v835_v17 = vmul.f32 %v943_v13, %v827_v63  ;;  %v861_v23 = vsel %vm116_vm0, %v853_v7, 0.0  ;;  %v860_v16 = vsel %vm116_vm0, %v852_v8, 0.0 }
 0x69b   :  { %v846_v21 = vmin.f32 %v838_v11, 1.0  ;;  %v850_v15 = vmin.f32 %v842_v12, 1.0  ;;  %v862_v34 = vadd.f32 %v861_v23, %v860_v16 }
 0x69c   :  { %v839_v22 = vmax.f32 %v831_v14, 0.0  ;;  %v843_v24 = vmax.f32 %v835_v17, 0.0 }
 0x69d   :  { %v854_v28 = vmul.f32 %v944_v25, %v846_v21  ;;  %v858_v50 = vmul.f32 %v944_v25, %v850_v15 }
 0x69e   :  { %v847_v32 = vmin.f32 %v839_v22, 1.0  ;;  %v851_v30 = vmin.f32 %v843_v24, 1.0 }
 0x69f   :  { %v863_v35 = vsel %vm116_vm0, %v854_v28, 0.0  ;;  %v876_v36 = vsel %vm116_vm0, %v858_v50, 0.0 }
 0x6a0   :  { %v855_v38 = vmul.f32 %v945_v40, %v847_v32  ;;  %v859_v3 = vmul.f32 %v945_v40, %v851_v30  ;;  %v864_v39 = vadd.f32 %v863_v35, %v862_v34  ;;  %v877_v43 = vadd.f32 %v876_v36, %v875_v31 }
 0x6a2   :  { %v865_v37 = vsel %vm116_vm0, %v855_v38, 0.0  ;;  %v878_v42 = vsel %vm116_vm0, %v859_v3, 0.0 }
 0x6a3   :  { %v866_v2 = vadd.f32 %v865_v37, %v864_v39  ;;  %v879_v45 = vadd.f32 %v878_v42, %v877_v43 }
 0x6a5   :  { %v867_v33 = vrot.slane %v866_v2, 4  ;;  %v880_v46 = vrot.slane %v879_v45, 4 }
 0x6a7   :  { %v868_v47 = vadd.f32 %v867_v33, %v866_v2  ;;  %v881_v48 = vadd.f32 %v880_v46, %v879_v45 }
 0x6a9   :  { %v869_v4 = vrot.slane %v868_v47, 2  ;;  %v882_v41 = vrot.slane %v881_v48, 2 }
 0x6ab   :  { %v870_v49 = vadd.f32 %v869_v4, %v868_v47  ;;  %v883_v51 = vadd.f32 %v882_v41, %v881_v48 }
 0x6ad   :  { %v871_v52 = vrot.slane %v870_v49, 1  ;;  %v884_v53 = vrot.slane %v883_v51, 1 }
 0x6af   :  { %v872_v54 = vadd.f32 %v871_v52, %v870_v49  ;;  %v885_v55 = vadd.f32 %v884_v53, %v883_v51 }
 0x6b1   :  { %v886_v56 = vadd.f32 %v872_v54, %v1171_v29  ;;  %v887_v57 = vadd.f32 %v885_v55, %v1165_v18 }
 0x6b3   :  { %v889_v58 = vmul.f32 0.016666668, %v887_v57  ;;  %v888_v62 = vmul.f32 0.016666668, %v886_v56 }
 0x6b5   :  { %v893_v59 = vrot.slane %v889_v58, 7 }
 0x6b7   :  { %v894_v61 = vsel %vm269_vm1, %v893_v59, %v888_v62 }
 0x6b8   :  { %897 = vrot.lane.b32.xlu1 %v894_v61, %s1038_s5  ;;  %v896_v0 = vadd.f32 %v894_v61, %v890_v60 }
 0x72a   :  { %v898_v1 = vpop.permute.xlu1 %897 }
 0x72b   :  { %v900_v5 = vadd.f32 %v898_v1, %v1179_v44 }
 0x72d   :  { %932 = vrcp.f32 %v900_v5 }
 0x73a   :  { %v933_v6 = vpop.eup %932 }
 0x73b   :  { %v902_v7 = vmul.f32 %v933_v6, %v900_v5 }
 0x73d   :  { %v903_v29 = vsub.f32 2.0, %v902_v7 }
 0x73f   :  { %v904_v8 = vmul.f32 %v933_v6, %v903_v29 }
 0x741   :  { %v905_v18 = vmul.f32 %v904_v8, %v896_v0 }
 0x743   :  { %907 = vst.msk [vmem:[%s1392_s6] sm:$0x3] %vm906_vm2, %v905_v18 }
 0x744   :  { %912 = vsyncpa [#allocation3], 1 }
 0x745   :  { %913 = vsyncpa [#allocation5], 1 }
 0x746   :  { %914 = vsyncpa [#allocation8], 1 }

</bundles_post_ra>
